<compile_context>
chip_gen: v7x
topology: tpu7x:2x2x1
jax: 0.10.0
libtpu: 0.0.40
codegen_flags: <defaults>
</compile_context>

<pallas_src>
import jax
import jax.numpy as jnp
import numpy as np
from jax.experimental import pallas as pl
from jax.experimental.pallas import tpu as pltpu


def _round_up(x, m):
    return (x + m - 1) // m * m


def _vmem_budget_bytes():
    # 3/4 of the physical per-core VMEM; conservative (v7x-sized) fallback.
    try:
        cap = pltpu.get_tpu_info().vmem_capacity_bytes
    except Exception:
        cap = 64 * 1024 * 1024
    return int(cap * 3 // 4)


def _tile_candidates(n_pad, cap):
    # Lane-dense (multiple-of-128) tile widths that divide n_pad, descending.
    return sorted((t for t in range(128, min(n_pad, cap) + 1, 128)
                   if n_pad % t == 0), reverse=True)


def _pass1_tile(n_pad, c_in, c_out, budget):
    # Per-column bytes: double-buffered A/mask input blocks plus the three
    # double-buffered output blocks (f32 + 2x bf16 per channel) plus roughly
    # four full-height f32 temporaries live inside the kernel body.
    per_col = n_pad * (2 * (4 * c_in + 4 + 8 * c_out) + 16)
    for t in _tile_candidates(n_pad, 512):
        if t * per_col <= budget:
            return t
    # TODO(synk): very large graphs (N_pad >~ 8k) need a two-phase
    # reduce-then-normalize restructure of pass 1; 128-wide columns are the
    # floor of what the full-height formulation supports.
    return 128


def _pass2_tile(n_pad, budget):
    # Resident bf16 A strip (double-buffered) + streamed bf16 B tile +
    # f32 output tile (double-buffered) + f32 accumulator scratch.
    for t in _tile_candidates(n_pad, 512):
        vmem = 4 * t * n_pad + (2 * 2 + 2 * 4 + 4) * t * t
        if vmem <= budget:
            return t
    return 128


# --------------------------------------------------------------------------
# Pass 1: fused dual GTConv + exp + EdgeWeightNorm('right'), all channels
# --------------------------------------------------------------------------
def _conv_norm_kernel(w1_ref, w2_ref, a_ref, mask_ref,
                      ra_ref, ra16_ref, rb16_ref):
    """One grid step = one destination-column tile, ALL output channels.

    w1_ref, w2_ref : SMEM (C_out, C_in)        GTConv weights (scalar reads)
    a_ref          : VMEM (C_in, N_pad, tcol)  relation adjacency column tile
    mask_ref       : VMEM (N_pad, tcol)        edge-existence mask tile
    ra_ref         : VMEM (C_out, N_pad, tcol) f32 normalized conv1 (result_A)
    ra16_ref       : VMEM (C_out, N_pad, tcol) bf16 copy of result_A (pass-2 lhs)
    rb16_ref       : VMEM (C_out, N_pad, tcol) bf16 normalized conv2 (pass-2 rhs)
    """
    c_in = a_ref.shape[0]
    c_out = ra_ref.shape[0]
    mask = mask_ref[...]

    # Each A[j] tile is loaded once and reused for every (channel, conv) pair,
    # so A / mask cross HBM exactly once per column tile.
    a_tiles = [a_ref[j] for j in range(c_in)]

    def norm(s):
        # th.exp on existing edges + EdgeWeightNorm('right'): divide by the
        # destination (column) incoming weight sum.  Matches torch (plain exp,
        # no max-shift); GTConv weights are ~N(0, 0.01) so logits are tiny.
        e = jnp.exp(s) * mask
        col = jnp.sum(e, axis=0, keepdims=True)
        col = jnp.where(col == 0.0, 1.0, col)     # isolated / padded dst -> 0
        return e * (1.0 / col)                    # exact: result_A is returned

    for i in range(c_out):                        # static, small
        s1 = jnp.zeros(mask.shape, jnp.float32)
        s2 = jnp.zeros(mask.shape, jnp.float32)
        for j in range(c_in):                     # static, small
            s1 = s1 + w1_ref[i, j] * a_tiles[j]
            s2 = s2 + w2_ref[i, j] * a_tiles[j]
        r1 = norm(s1)
        r2 = norm(s2)
        ra_ref[i] = r1
        ra16_ref[i] = r1.astype(jnp.bfloat16)
        rb16_ref[i] = r2.astype(jnp.bfloat16)


# --------------------------------------------------------------------------
# Pass 2: tiled adjacency product  H[c] = result_A[c] @ result_B[c]
# --------------------------------------------------------------------------
def _adj_product_kernel(a_ref, b_ref, o_ref, acc_ref):
    """a_ref : (1, t, N_pad) bf16 resident result_A row strip (per c, i)
       b_ref : (1, t, t)     bf16 streamed result_B tile
       o_ref : (1, t, t)     f32 output tile
       acc   : (t, t)        f32 accumulator scratch
    """
    k = pl.program_id(3)
    t = b_ref.shape[1]

    @pl.when(k == 0)
    def _():
        acc_ref[...] = jnp.zeros_like(acc_ref)

    off = pl.multiple_of(k * t, t)
    # bf16 operands hit the native MXU width; accumulate in f32.  Values are
    # column-normalized (<= 1), so the accuracy impact is negligible.
    acc_ref[...] += jnp.dot(a_ref[0, :, pl.ds(off, t)], b_ref[0],
                            preferred_element_type=jnp.float32)

    @pl.when(k == pl.num_programs(3) - 1)
    def _():
        o_ref[0] = acc_ref[...].astype(o_ref.dtype)


# --------------------------------------------------------------------------
# Wrapper: HMAELayer.forward (first=True branch)
# --------------------------------------------------------------------------
def hmae_layer(A, mask, w1, w2):
    """Returns (H, W, result_A), mirroring HMAELayer.forward with first=True."""
    # TODO(synk): first=False branch (result_A supplied externally, single
    # un-normalized GTConv for result_B) is omitted; only first=True here.
    c_in, n, _ = A.shape
    c_out = w1.shape[0]
    budget = _vmem_budget_bytes()

    n_pad = _round_up(n, 128)            # lane-dense last dim on every block
    pad = n_pad - n
    A_p = jnp.pad(A, ((0, 0), (0, pad), (0, pad)))
    mask_p = jnp.pad(mask, ((0, pad), (0, pad)))

    # ---------- pass 1: fused dual GTConv + exp + 'right' column norm ------
    tcol = _pass1_tile(n_pad, c_in, c_out, budget)
    cost1 = pl.CostEstimate(
        flops=int(c_out * n_pad * n_pad * (4 * c_in + 10)),
        transcendentals=int(2 * c_out * n_pad * n_pad),
        bytes_accessed=int(n_pad * n_pad * (4 * c_in + 4 + 8 * c_out)),
    )
    ra_p, ra16_p, rb16_p = pl.pallas_call(
        _conv_norm_kernel,
        out_shape=(
            jax.ShapeDtypeStruct((c_out, n_pad, n_pad), jnp.float32),
            jax.ShapeDtypeStruct((c_out, n_pad, n_pad), jnp.bfloat16),
            jax.ShapeDtypeStruct((c_out, n_pad, n_pad), jnp.bfloat16),
        ),
        grid_spec=pltpu.PrefetchScalarGridSpec(
            num_scalar_prefetch=0,
            grid=(n_pad // tcol,),
            in_specs=[
                pl.BlockSpec(memory_space=pltpu.MemorySpace.SMEM),   # w1 (tiny)
                pl.BlockSpec(memory_space=pltpu.MemorySpace.SMEM),   # w2 (tiny)
                pl.BlockSpec((c_in, n_pad, tcol), lambda t: (0, 0, t)),
                pl.BlockSpec((n_pad, tcol), lambda t: (0, t)),
            ],
            out_specs=[
                pl.BlockSpec((c_out, n_pad, tcol), lambda t: (0, 0, t)),
                pl.BlockSpec((c_out, n_pad, tcol), lambda t: (0, 0, t)),
                pl.BlockSpec((c_out, n_pad, tcol), lambda t: (0, 0, t)),
            ],
        ),
        compiler_params=pltpu.CompilerParams(
            dimension_semantics=("parallel",),
            vmem_limit_bytes=budget),
        cost_estimate=cost1,
    )(w1, w2, A_p, mask_p)

    # ---------- pass 2: tiled bf16 matmul (adj_product_graph) --------------
    t = _pass2_tile(n_pad, budget)
    kt = n_pad // t
    cost2 = pl.CostEstimate(
        flops=int(2 * c_out * n_pad ** 3),
        transcendentals=0,
        # Resident bf16 A strip read once per (c, i); bf16 B tiles streamed
        # per k step; f32 H written once.
        bytes_accessed=int(c_out * n_pad * n_pad * (2 + 4)
                           + 2 * c_out * n_pad ** 3 // t),
    )
    h_p = pl.pallas_call(
        _adj_product_kernel,
        out_shape=jax.ShapeDtypeStruct((c_out, n_pad, n_pad), jnp.float32),
        grid_spec=pltpu.PrefetchScalarGridSpec(
            num_scalar_prefetch=0,
            grid=(c_out, n_pad // t, n_pad // t, kt),
            in_specs=[
                # Row strip of result_A: index map independent of (j, k), so
                # it stays resident in VMEM across the whole j/k sweep.
                pl.BlockSpec((1, t, n_pad), lambda c, i, j, k: (c, i, 0)),
                pl.BlockSpec((1, t, t), lambda c, i, j, k: (c, k, j)),
            ],
            out_specs=pl.BlockSpec((1, t, t), lambda c, i, j, k: (c, i, j)),
            scratch_shapes=[pltpu.VMEM((t, t), jnp.float32)],
        ),
        compiler_params=pltpu.CompilerParams(
            dimension_semantics=("parallel", "parallel", "parallel", "arbitrary"),
            vmem_limit_bytes=budget),
        cost_estimate=cost2,
    )(ra16_p, rb16_p)

    H = h_p[:, :n, :n]
    result_A = ra_p[:, :n, :n]
    W = (w1, w2)            # the torch module returns the (detached) weights
    return H, W, result_A


def _reference(A, mask, w1, w2):
    """Pure-JAX f32 reference for correctness checking."""
    def conv_softmax_norm(w):
        s = jnp.einsum("oc,cuv->ouv", w, A)
        e = jnp.exp(s) * mask[None]
        col = jnp.sum(e, axis=1, keepdims=True)
        col = jnp.where(col == 0.0, 1.0, col)
        return e / col

    na = conv_softmax_norm(w1)
    nb = conv_softmax_norm(w2)
    h = jnp.einsum("ouk,okv->ouv", na, nb)
    return h, na


if __name__ == "__main__":
    C_IN, C_OUT, N = 4, 2, 16

    key = jax.random.PRNGKey(0)
    k_a, k_m, k_w1, k_w2 = jax.random.split(key, 4)

    # Edge structure: random edges plus self-loops (shared across relations).
    mask = (jax.random.uniform(k_m, (N, N)) < 0.4).astype(jnp.float32)
    mask = jnp.maximum(mask, jnp.eye(N, dtype=jnp.float32))
    # Per-relation edge weights on the existing edges.
    A = jnp.abs(jax.random.normal(k_a, (C_IN, N, N), jnp.float32)) * mask[None]

    # GTConv weights: nn.init.normal_(std=0.01), deterministic.
    w1 = 0.01 * jax.random.normal(k_w1, (C_OUT, C_IN), jnp.float32)
    w2 = 0.01 * jax.random.normal(k_w2, (C_OUT, C_IN), jnp.float32)

    H, W, result_A = hmae_layer(A, mask, w1, w2)
    jax.block_until_ready(H)
    jax.block_until_ready(result_A)

    H_ref, result_A_ref = _reference(A, mask, w1, w2)
    # result_A is computed fully in f32 with an exact column normalization;
    # H uses bf16 MXU operands with an f32 accumulator (~0.3% rel error).
    np.testing.assert_allclose(np.asarray(result_A), np.asarray(result_A_ref),
                               rtol=2e-3, atol=1e-6)
    np.testing.assert_allclose(np.asarray(H), np.asarray(H_ref),
                               rtol=2e-2, atol=1e-5)

    print("KERNEL_OK")
</pallas_src>

<mosaic_0001>
module attributes {stable_mosaic.version = 11 : i64} {
  func.func @_conv_norm_kernel(%arg0: i32, %arg1: memref<2x4xf32, #tpu.memory_space<smem>>, %arg2: memref<2x4xf32, #tpu.memory_space<smem>>, %arg3: memref<4x128x128xf32, #tpu.memory_space<vmem>>, %arg4: memref<128x128xf32, #tpu.memory_space<vmem>>, %arg5: memref<2x128x128xf32, #tpu.memory_space<vmem>>, %arg6: memref<2x128x128xbf16, #tpu.memory_space<vmem>>, %arg7: memref<2x128x128xbf16, #tpu.memory_space<vmem>>) attributes {dimension_semantics = [#tpu.dimension_semantics<parallel>], iteration_bounds = array<i64: 1>, scalar_prefetch = 0 : i64, scratch_operands = 0 : i64, tpu.core_type = #tpu.core_type<tc>, window_params = [{transform_indices = @transform_0, window_bounds = array<i64: 2, 4>}, {transform_indices = @transform_1, window_bounds = array<i64: 2, 4>}, {transform_indices = @transform_2, window_bounds = array<i64: 4, 128, 128>}, {transform_indices = @transform_3, window_bounds = array<i64: 128, 128>}, {transform_indices = @transform_4, window_bounds = array<i64: 2, 128, 128>}, {transform_indices = @transform_5, window_bounds = array<i64: 2, 128, 128>}, {transform_indices = @transform_6, window_bounds = array<i64: 2, 128, 128>}]} {
    %c0 = arith.constant 0 : index
    %c0_0 = arith.constant 0 : index
    %0 = vector.load %arg4[%c0, %c0_0] : memref<128x128xf32, #tpu.memory_space<vmem>>, vector<128x128xf32>
    %c0_1 = arith.constant 0 : index
    %c0_2 = arith.constant 0 : index
    %c0_3 = arith.constant 0 : index
    %1 = vector.load %arg3[%c0_1, %c0_2, %c0_3] : memref<4x128x128xf32, #tpu.memory_space<vmem>>, vector<1x128x128xf32>
    %2 = vector.shape_cast %1 : vector<1x128x128xf32> to vector<128x128xf32>
    %c1 = arith.constant 1 : index
    %c0_4 = arith.constant 0 : index
    %c0_5 = arith.constant 0 : index
    %3 = vector.load %arg3[%c1, %c0_4, %c0_5] : memref<4x128x128xf32, #tpu.memory_space<vmem>>, vector<1x128x128xf32>
    %4 = vector.shape_cast %3 : vector<1x128x128xf32> to vector<128x128xf32>
    %c2 = arith.constant 2 : index
    %c0_6 = arith.constant 0 : index
    %c0_7 = arith.constant 0 : index
    %5 = vector.load %arg3[%c2, %c0_6, %c0_7] : memref<4x128x128xf32, #tpu.memory_space<vmem>>, vector<1x128x128xf32>
    %6 = vector.shape_cast %5 : vector<1x128x128xf32> to vector<128x128xf32>
    %c3 = arith.constant 3 : index
    %c0_8 = arith.constant 0 : index
    %c0_9 = arith.constant 0 : index
    %7 = vector.load %arg3[%c3, %c0_8, %c0_9] : memref<4x128x128xf32, #tpu.memory_space<vmem>>, vector<1x128x128xf32>
    %8 = vector.shape_cast %7 : vector<1x128x128xf32> to vector<128x128xf32>
    %cst = arith.constant 0.000000e+00 : f32
    %9 = vector.broadcast %cst : f32 to vector<128x128xf32>
    %cst_10 = arith.constant 0.000000e+00 : f32
    %10 = vector.broadcast %cst_10 : f32 to vector<128x128xf32>
    %c0_11 = arith.constant 0 : index
    %c0_12 = arith.constant 0 : index
    %11 = memref.load %arg1[%c0_11, %c0_12] : memref<2x4xf32, #tpu.memory_space<smem>>
    %12 = vector.broadcast %11 : f32 to vector<128x128xf32>
    %13 = arith.mulf %12, %2 : vector<128x128xf32>
    %14 = arith.addf %9, %13 : vector<128x128xf32>
    %c0_13 = arith.constant 0 : index
    %c0_14 = arith.constant 0 : index
    %15 = memref.load %arg2[%c0_13, %c0_14] : memref<2x4xf32, #tpu.memory_space<smem>>
    %16 = vector.broadcast %15 : f32 to vector<128x128xf32>
    %17 = arith.mulf %16, %2 : vector<128x128xf32>
    %18 = arith.addf %10, %17 : vector<128x128xf32>
    %c0_15 = arith.constant 0 : index
    %c1_16 = arith.constant 1 : index
    %19 = memref.load %arg1[%c0_15, %c1_16] : memref<2x4xf32, #tpu.memory_space<smem>>
    %20 = vector.broadcast %19 : f32 to vector<128x128xf32>
    %21 = arith.mulf %20, %4 : vector<128x128xf32>
    %22 = arith.addf %14, %21 : vector<128x128xf32>
    %c0_17 = arith.constant 0 : index
    %c1_18 = arith.constant 1 : index
    %23 = memref.load %arg2[%c0_17, %c1_18] : memref<2x4xf32, #tpu.memory_space<smem>>
    %24 = vector.broadcast %23 : f32 to vector<128x128xf32>
    %25 = arith.mulf %24, %4 : vector<128x128xf32>
    %26 = arith.addf %18, %25 : vector<128x128xf32>
    %c0_19 = arith.constant 0 : index
    %c2_20 = arith.constant 2 : index
    %27 = memref.load %arg1[%c0_19, %c2_20] : memref<2x4xf32, #tpu.memory_space<smem>>
    %28 = vector.broadcast %27 : f32 to vector<128x128xf32>
    %29 = arith.mulf %28, %6 : vector<128x128xf32>
    %30 = arith.addf %22, %29 : vector<128x128xf32>
    %c0_21 = arith.constant 0 : index
    %c2_22 = arith.constant 2 : index
    %31 = memref.load %arg2[%c0_21, %c2_22] : memref<2x4xf32, #tpu.memory_space<smem>>
    %32 = vector.broadcast %31 : f32 to vector<128x128xf32>
    %33 = arith.mulf %32, %6 : vector<128x128xf32>
    %34 = arith.addf %26, %33 : vector<128x128xf32>
    %c0_23 = arith.constant 0 : index
    %c3_24 = arith.constant 3 : index
    %35 = memref.load %arg1[%c0_23, %c3_24] : memref<2x4xf32, #tpu.memory_space<smem>>
    %36 = vector.broadcast %35 : f32 to vector<128x128xf32>
    %37 = arith.mulf %36, %8 : vector<128x128xf32>
    %38 = arith.addf %30, %37 : vector<128x128xf32>
    %c0_25 = arith.constant 0 : index
    %c3_26 = arith.constant 3 : index
    %39 = memref.load %arg2[%c0_25, %c3_26] : memref<2x4xf32, #tpu.memory_space<smem>>
    %40 = vector.broadcast %39 : f32 to vector<128x128xf32>
    %41 = arith.mulf %40, %8 : vector<128x128xf32>
    %42 = arith.addf %34, %41 : vector<128x128xf32>
    %43 = math.exp %38 : vector<128x128xf32>
    %44 = arith.mulf %43, %0 : vector<128x128xf32>
    %cst_27 = arith.constant dense<0.000000e+00> : vector<128xf32>
    %45 = vector.multi_reduction <add>, %44, %cst_27 [0] : vector<128x128xf32> to vector<128xf32>
    %46 = vector.shape_cast %45 : vector<128xf32> to vector<1x128xf32>
    %cst_28 = arith.constant 0.000000e+00 : f32
    %47 = vector.broadcast %cst_28 : f32 to vector<1x128xf32>
    %48 = arith.cmpf oeq, %46, %47 : vector<1x128xf32>
    %cst_29 = arith.constant 1.000000e+00 : f32
    %49 = vector.broadcast %cst_29 : f32 to vector<1x128xf32>
    %50 = arith.select %48, %49, %46 : vector<1x128xi1>, vector<1x128xf32>
    %cst_30 = arith.constant 1.000000e+00 : f32
    %51 = vector.broadcast %cst_30 : f32 to vector<1x128xf32>
    %52 = arith.divf %51, %50 : vector<1x128xf32>
    %53 = vector.broadcast %52 : vector<1x128xf32> to vector<128x128xf32>
    %54 = arith.mulf %44, %53 : vector<128x128xf32>
    %55 = math.exp %42 : vector<128x128xf32>
    %56 = arith.mulf %55, %0 : vector<128x128xf32>
    %cst_31 = arith.constant dense<0.000000e+00> : vector<128xf32>
    %57 = vector.multi_reduction <add>, %56, %cst_31 [0] : vector<128x128xf32> to vector<128xf32>
    %58 = vector.shape_cast %57 : vector<128xf32> to vector<1x128xf32>
    %cst_32 = arith.constant 0.000000e+00 : f32
    %59 = vector.broadcast %cst_32 : f32 to vector<1x128xf32>
    %60 = arith.cmpf oeq, %58, %59 : vector<1x128xf32>
    %cst_33 = arith.constant 1.000000e+00 : f32
    %61 = vector.broadcast %cst_33 : f32 to vector<1x128xf32>
    %62 = arith.select %60, %61, %58 : vector<1x128xi1>, vector<1x128xf32>
    %cst_34 = arith.constant 1.000000e+00 : f32
    %63 = vector.broadcast %cst_34 : f32 to vector<1x128xf32>
    %64 = arith.divf %63, %62 : vector<1x128xf32>
    %65 = vector.broadcast %64 : vector<1x128xf32> to vector<128x128xf32>
    %66 = arith.mulf %56, %65 : vector<128x128xf32>
    %c0_35 = arith.constant 0 : index
    %c0_36 = arith.constant 0 : index
    %c0_37 = arith.constant 0 : index
    %67 = vector.load %arg5[%c0_35, %c0_36, %c0_37] : memref<2x128x128xf32, #tpu.memory_space<vmem>>, vector<1x128x128xf32>
    %68 = vector.shape_cast %67 : vector<1x128x128xf32> to vector<128x128xf32>
    %69 = vector.shape_cast %54 : vector<128x128xf32> to vector<1x128x128xf32>
    tpu.vector_store %arg5[%c0_35, %c0_36, %c0_37], %69 {strides = array<i32>} : memref<2x128x128xf32, #tpu.memory_space<vmem>>, vector<1x128x128xf32>,
    %70 = arith.truncf %54 : vector<128x128xf32> to vector<128x128xbf16>
    %c0_38 = arith.constant 0 : index
    %c0_39 = arith.constant 0 : index
    %c0_40 = arith.constant 0 : index
    %71 = vector.load %arg6[%c0_38, %c0_39, %c0_40] : memref<2x128x128xbf16, #tpu.memory_space<vmem>>, vector<1x128x128xbf16>
    %72 = vector.shape_cast %71 : vector<1x128x128xbf16> to vector<128x128xbf16>
    %73 = vector.shape_cast %70 : vector<128x128xbf16> to vector<1x128x128xbf16>
    tpu.vector_store %arg6[%c0_38, %c0_39, %c0_40], %73 {strides = array<i32>} : memref<2x128x128xbf16, #tpu.memory_space<vmem>>, vector<1x128x128xbf16>,
    %74 = arith.truncf %66 : vector<128x128xf32> to vector<128x128xbf16>
    %c0_41 = arith.constant 0 : index
    %c0_42 = arith.constant 0 : index
    %c0_43 = arith.constant 0 : index
    %75 = vector.load %arg7[%c0_41, %c0_42, %c0_43] : memref<2x128x128xbf16, #tpu.memory_space<vmem>>, vector<1x128x128xbf16>
    %76 = vector.shape_cast %75 : vector<1x128x128xbf16> to vector<128x128xbf16>
    %77 = vector.shape_cast %74 : vector<128x128xbf16> to vector<1x128x128xbf16>
    tpu.vector_store %arg7[%c0_41, %c0_42, %c0_43], %77 {strides = array<i32>} : memref<2x128x128xbf16, #tpu.memory_space<vmem>>, vector<1x128x128xbf16>,
    %cst_44 = arith.constant 0.000000e+00 : f32
    %78 = vector.broadcast %cst_44 : f32 to vector<128x128xf32>
    %cst_45 = arith.constant 0.000000e+00 : f32
    %79 = vector.broadcast %cst_45 : f32 to vector<128x128xf32>
    %c1_46 = arith.constant 1 : index
    %c0_47 = arith.constant 0 : index
    %80 = memref.load %arg1[%c1_46, %c0_47] : memref<2x4xf32, #tpu.memory_space<smem>>
    %81 = vector.broadcast %80 : f32 to vector<128x128xf32>
    %82 = arith.mulf %81, %2 : vector<128x128xf32>
    %83 = arith.addf %78, %82 : vector<128x128xf32>
    %c1_48 = arith.constant 1 : index
    %c0_49 = arith.constant 0 : index
    %84 = memref.load %arg2[%c1_48, %c0_49] : memref<2x4xf32, #tpu.memory_space<smem>>
    %85 = vector.broadcast %84 : f32 to vector<128x128xf32>
    %86 = arith.mulf %85, %2 : vector<128x128xf32>
    %87 = arith.addf %79, %86 : vector<128x128xf32>
    %c1_50 = arith.constant 1 : index
    %c1_51 = arith.constant 1 : index
    %88 = memref.load %arg1[%c1_50, %c1_51] : memref<2x4xf32, #tpu.memory_space<smem>>
    %89 = vector.broadcast %88 : f32 to vector<128x128xf32>
    %90 = arith.mulf %89, %4 : vector<128x128xf32>
    %91 = arith.addf %83, %90 : vector<128x128xf32>
    %c1_52 = arith.constant 1 : index
    %c1_53 = arith.constant 1 : index
    %92 = memref.load %arg2[%c1_52, %c1_53] : memref<2x4xf32, #tpu.memory_space<smem>>
    %93 = vector.broadcast %92 : f32 to vector<128x128xf32>
    %94 = arith.mulf %93, %4 : vector<128x128xf32>
    %95 = arith.addf %87, %94 : vector<128x128xf32>
    %c1_54 = arith.constant 1 : index
    %c2_55 = arith.constant 2 : index
    %96 = memref.load %arg1[%c1_54, %c2_55] : memref<2x4xf32, #tpu.memory_space<smem>>
    %97 = vector.broadcast %96 : f32 to vector<128x128xf32>
    %98 = arith.mulf %97, %6 : vector<128x128xf32>
    %99 = arith.addf %91, %98 : vector<128x128xf32>
    %c1_56 = arith.constant 1 : index
    %c2_57 = arith.constant 2 : index
    %100 = memref.load %arg2[%c1_56, %c2_57] : memref<2x4xf32, #tpu.memory_space<smem>>
    %101 = vector.broadcast %100 : f32 to vector<128x128xf32>
    %102 = arith.mulf %101, %6 : vector<128x128xf32>
    %103 = arith.addf %95, %102 : vector<128x128xf32>
    %c1_58 = arith.constant 1 : index
    %c3_59 = arith.constant 3 : index
    %104 = memref.load %arg1[%c1_58, %c3_59] : memref<2x4xf32, #tpu.memory_space<smem>>
    %105 = vector.broadcast %104 : f32 to vector<128x128xf32>
    %106 = arith.mulf %105, %8 : vector<128x128xf32>
    %107 = arith.addf %99, %106 : vector<128x128xf32>
    %c1_60 = arith.constant 1 : index
    %c3_61 = arith.constant 3 : index
    %108 = memref.load %arg2[%c1_60, %c3_61] : memref<2x4xf32, #tpu.memory_space<smem>>
    %109 = vector.broadcast %108 : f32 to vector<128x128xf32>
    %110 = arith.mulf %109, %8 : vector<128x128xf32>
    %111 = arith.addf %103, %110 : vector<128x128xf32>
    %112 = math.exp %107 : vector<128x128xf32>
    %113 = arith.mulf %112, %0 : vector<128x128xf32>
    %cst_62 = arith.constant dense<0.000000e+00> : vector<128xf32>
    %114 = vector.multi_reduction <add>, %113, %cst_62 [0] : vector<128x128xf32> to vector<128xf32>
    %115 = vector.shape_cast %114 : vector<128xf32> to vector<1x128xf32>
    %cst_63 = arith.constant 0.000000e+00 : f32
    %116 = vector.broadcast %cst_63 : f32 to vector<1x128xf32>
    %117 = arith.cmpf oeq, %115, %116 : vector<1x128xf32>
    %cst_64 = arith.constant 1.000000e+00 : f32
    %118 = vector.broadcast %cst_64 : f32 to vector<1x128xf32>
    %119 = arith.select %117, %118, %115 : vector<1x128xi1>, vector<1x128xf32>
    %cst_65 = arith.constant 1.000000e+00 : f32
    %120 = vector.broadcast %cst_65 : f32 to vector<1x128xf32>
    %121 = arith.divf %120, %119 : vector<1x128xf32>
    %122 = vector.broadcast %121 : vector<1x128xf32> to vector<128x128xf32>
    %123 = arith.mulf %113, %122 : vector<128x128xf32>
    %124 = math.exp %111 : vector<128x128xf32>
    %125 = arith.mulf %124, %0 : vector<128x128xf32>
    %cst_66 = arith.constant dense<0.000000e+00> : vector<128xf32>
    %126 = vector.multi_reduction <add>, %125, %cst_66 [0] : vector<128x128xf32> to vector<128xf32>
    %127 = vector.shape_cast %126 : vector<128xf32> to vector<1x128xf32>
    %cst_67 = arith.constant 0.000000e+00 : f32
    %128 = vector.broadcast %cst_67 : f32 to vector<1x128xf32>
    %129 = arith.cmpf oeq, %127, %128 : vector<1x128xf32>
    %cst_68 = arith.constant 1.000000e+00 : f32
    %130 = vector.broadcast %cst_68 : f32 to vector<1x128xf32>
    %131 = arith.select %129, %130, %127 : vector<1x128xi1>, vector<1x128xf32>
    %cst_69 = arith.constant 1.000000e+00 : f32
    %132 = vector.broadcast %cst_69 : f32 to vector<1x128xf32>
    %133 = arith.divf %132, %131 : vector<1x128xf32>
    %134 = vector.broadcast %133 : vector<1x128xf32> to vector<128x128xf32>
    %135 = arith.mulf %125, %134 : vector<128x128xf32>
    %c1_70 = arith.constant 1 : index
    %c0_71 = arith.constant 0 : index
    %c0_72 = arith.constant 0 : index
    %136 = vector.load %arg5[%c1_70, %c0_71, %c0_72] : memref<2x128x128xf32, #tpu.memory_space<vmem>>, vector<1x128x128xf32>
    %137 = vector.shape_cast %136 : vector<1x128x128xf32> to vector<128x128xf32>
    %138 = vector.shape_cast %123 : vector<128x128xf32> to vector<1x128x128xf32>
    tpu.vector_store %arg5[%c1_70, %c0_71, %c0_72], %138 {strides = array<i32>} : memref<2x128x128xf32, #tpu.memory_space<vmem>>, vector<1x128x128xf32>,
    %139 = arith.truncf %123 : vector<128x128xf32> to vector<128x128xbf16>
    %c1_73 = arith.constant 1 : index
    %c0_74 = arith.constant 0 : index
    %c0_75 = arith.constant 0 : index
    %140 = vector.load %arg6[%c1_73, %c0_74, %c0_75] : memref<2x128x128xbf16, #tpu.memory_space<vmem>>, vector<1x128x128xbf16>
    %141 = vector.shape_cast %140 : vector<1x128x128xbf16> to vector<128x128xbf16>
    %142 = vector.shape_cast %139 : vector<128x128xbf16> to vector<1x128x128xbf16>
    tpu.vector_store %arg6[%c1_73, %c0_74, %c0_75], %142 {strides = array<i32>} : memref<2x128x128xbf16, #tpu.memory_space<vmem>>, vector<1x128x128xbf16>,
    %143 = arith.truncf %135 : vector<128x128xf32> to vector<128x128xbf16>
    %c1_76 = arith.constant 1 : index
    %c0_77 = arith.constant 0 : index
    %c0_78 = arith.constant 0 : index
    %144 = vector.load %arg7[%c1_76, %c0_77, %c0_78] : memref<2x128x128xbf16, #tpu.memory_space<vmem>>, vector<1x128x128xbf16>
    %145 = vector.shape_cast %144 : vector<1x128x128xbf16> to vector<128x128xbf16>
    %146 = vector.shape_cast %143 : vector<128x128xbf16> to vector<1x128x128xbf16>
    tpu.vector_store %arg7[%c1_76, %c0_77, %c0_78], %146 {strides = array<i32>} : memref<2x128x128xbf16, #tpu.memory_space<vmem>>, vector<1x128x128xbf16>,
    return
  }
  func.func @transform_0(%arg0: i32) -> (i32, i32) {
    %c0_i32 = arith.constant 0 : i32
    %c0_i32_0 = arith.constant 0 : i32
    %c0_i32_1 = arith.constant 0 : i32
    return %c0_i32, %c0_i32_0 : i32, i32
  }
  func.func @transform_1(%arg0: i32) -> (i32, i32) {
    %c0_i32 = arith.constant 0 : i32
    %c0_i32_0 = arith.constant 0 : i32
    %c0_i32_1 = arith.constant 0 : i32
    return %c0_i32, %c0_i32_0 : i32, i32
  }
  func.func @transform_2(%arg0: i32) -> (i32, i32, i32) {
    %c0_i32 = arith.constant 0 : i32
    %c0_i32_0 = arith.constant 0 : i32
    %c0_i32_1 = arith.constant 0 : i32
    return %c0_i32, %c0_i32_0, %arg0 : i32, i32, i32
  }
  func.func @transform_3(%arg0: i32) -> (i32, i32) {
    %c0_i32 = arith.constant 0 : i32
    %c0_i32_0 = arith.constant 0 : i32
    return %c0_i32, %arg0 : i32, i32
  }
  func.func @transform_4(%arg0: i32) -> (i32, i32, i32) {
    %c0_i32 = arith.constant 0 : i32
    %c0_i32_0 = arith.constant 0 : i32
    %c0_i32_1 = arith.constant 0 : i32
    return %c0_i32, %c0_i32_0, %arg0 : i32, i32, i32
  }
  func.func @transform_5(%arg0: i32) -> (i32, i32, i32) {
    %c0_i32 = arith.constant 0 : i32
    %c0_i32_0 = arith.constant 0 : i32
    %c0_i32_1 = arith.constant 0 : i32
    return %c0_i32, %c0_i32_0, %arg0 : i32, i32, i32
  }
  func.func @transform_6(%arg0: i32) -> (i32, i32, i32) {
    %c0_i32 = arith.constant 0 : i32
    %c0_i32_0 = arith.constant 0 : i32
    %c0_i32_1 = arith.constant 0 : i32
    return %c0_i32, %c0_i32_0, %arg0 : i32, i32, i32
  }
}

</mosaic_0001>

<bundles_post_ra>
// kernel: tpu_custom_call.1
= control target key start
LH: loop header
LB: loop body
LE: loop exit
PB: predicated region body
PF: predicated region fallthrough
CT: control target
= control target key end

     0   :  { %12 = vsyncpa [#allocation5], 0  ;;  %s3516_s0 = inlined_call_operand.hbm [shape: f32[2,4], index: 0, kind: input, shape index: {}]   ;;  %s3517_s1 = inlined_call_operand.vmem [shape: f32[2,4], index: 1, kind: input, shape index: {}]   ;;  %s3518_s2 = inlined_call_operand.hbm [shape: f32[4,128,128], index: 2, kind: input, shape index: {}]   ;;  %s3519_s3 = inlined_call_operand.hbm [shape: f32[128,128], index: 3, kind: input, shape index: {}]   ;;  %s3520_s4 = inlined_call_operand.hbm [shape: f32[2,128,128], index: 4, kind: output, shape index: {0}]   ;;  %s3521_s5 = inlined_call_operand.hbm [shape: bf16[2,128,128], index: 5, kind: output, shape index: {1}]   ;;  %s3522_s6 = inlined_call_operand.hbm [shape: bf16[2,128,128], index: 6, kind: output, shape index: {2}]  }
   0x1   :  { %13 = vsyncpa [#allocation6], 0 }
   0x2   :  { %14 = vsyncpa [#allocation3], 0 }
   0x3   :  { %15 = vsyncpa [#allocation10], 0 }
   0x4   :  { %16 = vsyncpa [#allocation4], 0 }
   0x5   :  { %17 = vsyncpa [#allocation13], 0  ;;  %s32_s23 = sshll.u32 %s3517_s1, 4  ;;  %s2019_s26 = scalar_lea.hbm %s3516_s0, 32  ;;  %s33_s23 = int_to_ptr.vmem [resolvable:$true] %s32_s23 }
   0x6   :  { %p2020_p0 = scmp.ne.s32.totalorder %s3516_s0, %s2019_s26  ;;  %p2023_p1 = scmp.lt.u32.totalorder %s2019_s26, %s3516_s0 }
   0x8   :  { %p2025_p2 = pnand %p2023_p1, %p2020_p0 }
   0xa   :  { %2028 = shalt.err (!%p2025_p2)
}
   0xb   :  { %s2163_s7 = smov [#allocation2]   ;;  %s2029_s1 = scalar_lea.vmem %s33_s23, 32 }
   0xc   :  { %25 = dma.hbm_to_smem %s3516_s0, 32, %s2163_s7, [#allocation5]  }
   0xd   :  { %p2030_p3 = scmp.ne.s32.totalorder %s33_s23, %s2029_s1  ;;  %p2034_p4 = scmp.lt.s32.totalorder %s33_s23, %s33_s23 }
   0xe   :  { %p2035_p5 = scmp.lt.s32.totalorder %s2029_s1, %s2029_s1 }
  0x10   :  { %p2036_p6 = por %p2035_p5, %p2034_p4 }
  0x12   :  { %p2037_p7 = pnand %p2036_p6, %p2030_p3 }
  0x14   :  { %2040 = shalt.err (!%p2037_p7)
}
  0x15   :  { %s2164_s10 = smov [#allocation7]   ;;  %s2165_s11 = smov [#allocation8]  }
  0x16   :  { %35 = dma.vmem_to_smem %s33_s23, 32, %s2164_s10, [#allocation6]  }
  0x17   :  { %s41_s12 = sshll.u32 %s2165_s11, 4  ;;  %s2041_s15 = scalar_lea.hbm %s3518_s2, 8192  ;;  %s42_s12 = int_to_ptr.vmem [resolvable:$true] %s41_s12 }
  0x18   :  { %p2042_p8 = scmp.ne.s32.totalorder %s3518_s2, %s2041_s15  ;;  %p2045_p9 = scmp.lt.u32.totalorder %s2041_s15, %s3518_s2 }
  0x1a   :  { %p2047_p10 = pnand %p2045_p9, %p2042_p8 }
  0x1c   :  { %2050 = shalt.err (!%p2047_p10)
}
  0x1d   :  { %s2051_s19 = scalar_lea.vmem %s42_s12, 8192  ;;  %p2056_p12 = scmp.lt.s32.totalorder %s42_s12, %s42_s12 }
  0x1e   :  { %p2052_p11 = scmp.ne.s32.totalorder %s42_s12, %s2051_s19  ;;  %p2057_p13 = scmp.lt.s32.totalorder %s2051_s19, %s2051_s19 }
  0x20   :  { %p2058_p0 = por %p2057_p13, %p2056_p12 }
  0x22   :  { %p2059_p1 = pnand %p2058_p0, %p2052_p11 }
  0x24   :  { %2062 = shalt.err (!%p2059_p1)
}
  0x25   :  { %s2166_s20 = smov 128   ;;  %s2167_s21 = smov 8  }
  0x26   :  { %47 = dma.hbm_to_vmem [thread:$0]  %s3518_s2, 8192, %s42_s12, [#allocation3], %s2166_s20, %s2166_s20, %s2167_s21  }
  0x27   :  { %s2168_s24 = smov [#allocation9]   ;;  %s2063_s28 = scalar_lea.hbm %s3519_s3, 2048 }
  0x28   :  { %s53_s25 = sshll.u32 %s2168_s24, 4  ;;  %p2064_p2 = scmp.ne.s32.totalorder %s3519_s3, %s2063_s28  ;;  %s54_s25 = int_to_ptr.vmem [resolvable:$true] %s53_s25 }
  0x29   :  { %p2067_p3 = scmp.lt.u32.totalorder %s2063_s28, %s3519_s3 }
  0x2b   :  { %p2069_p4 = pnand %p2067_p3, %p2064_p2 }
  0x2d   :  { %2072 = shalt.err (!%p2069_p4)
}
  0x2e   :  { %s2073_s9 = scalar_lea.vmem %s54_s25, 2048  ;;  %p2078_p6 = scmp.lt.s32.totalorder %s54_s25, %s54_s25 }
  0x2f   :  { %p2074_p5 = scmp.ne.s32.totalorder %s54_s25, %s2073_s9  ;;  %p2079_p7 = scmp.lt.s32.totalorder %s2073_s9, %s2073_s9 }
  0x31   :  { %p2080_p8 = por %p2079_p7, %p2078_p6 }
  0x33   :  { %p2081_p9 = pnand %p2080_p8, %p2074_p5 }
  0x35   :  { %2084 = shalt.err (!%p2081_p9)
}
  0x36   :  { %59 = dma.hbm_to_vmem [thread:$0]  %s3519_s3, 2048, %s54_s25, [#allocation10], %s2166_s20, %s2166_s20, %s2167_s21  }
  0x37   :  { %2151 = dma.done.wait [#allocation5], 32  }
  0x38   :  { %2152 = vsyncadd [#allocation5], 4294967264 }
  0x39   :  { %2153 = dma.done.wait [#allocation6], 32  }
  0x3a   :  { %2154 = vsyncadd [#allocation6], 4294967264 }
  0x3b   :  { %2155 = dma.done.wait [#allocation3], 8192  }
  0x3c   :  { %2156 = vsyncadd [#allocation3], 4294959104 }
  0x3d   :  { %2157 = dma.done.wait [#allocation10], 2048  }
  0x3e   :  { %2158 = vsyncadd [#allocation10], 4294965248 }
  0x3f   :  { %72 = sfence }
  0x40   :  { %s156_s10 = sld [smem:[#allocation2]]  ;;  %s1462_s11 = sld [smem:[#allocation2 + $0x1]]  ;;  %v2254_v0 = vld [vmem:[#allocation8] sm:$0xff]  ;;  %v2256_v1 = vld [vmem:[#allocation8 + $0x8] sm:$0xff]  ;;  %v2258_v2 = vld [vmem:[#allocation8 + $0x10] sm:$0xff] }
  0x41   :  { %3665 = vst [vmem:[#allocation21_spill] sm:$0xff] %v2254_v0  ;;  %3666 = vst [vmem:[#allocation22_spill] sm:$0xff] %v2256_v1  ;;  %s2260_s12 = sld [smem:[#allocation2 + $0x2]]  ;;  %v2262_v3 = vld [vmem:[#allocation8 + $0x18] sm:$0xff]  ;;  %v2264_v4 = vld [vmem:[#allocation8 + $0x20] sm:$0xff]  ;;  %s2268_s3 = sld [smem:[#allocation2 + $0x3]] }
  0x42   :  { %3667 = vst [vmem:[#allocation23_spill] sm:$0xff] %v2258_v2  ;;  %3668 = vst [vmem:[#allocation24_spill] sm:$0xff] %v2262_v3  ;;  %v2266_v5 = vld [vmem:[#allocation8 + $0x28] sm:$0xff]  ;;  %v2270_v7 = vld [vmem:[#allocation8 + $0x30] sm:$0xff]  ;;  %s2468_s13 = sld [smem:[#allocation2 + $0x80]]  ;;  %s2505_s14 = sld [smem:[#allocation2 + $0x81]] }
  0x43   :  { %3669 = vst [vmem:[#allocation25_spill] sm:$0xff] %v2264_v4  ;;  %3670 = vst [vmem:[#allocation26_spill] sm:$0xff] %v2266_v5  ;;  %v2272_v8 = vld [vmem:[#allocation8 + $0x38] sm:$0xff]  ;;  %v2274_v9 = vld [vmem:[#allocation8 + $0x40] sm:$0xff]  ;;  %s2519_s15 = sld [smem:[#allocation2 + $0x82]]  ;;  %s2524_s16 = sld [smem:[#allocation2 + $0x83]] }
  0x44   :  { %3671 = vst [vmem:[#allocation27_spill] sm:$0xff] %v2270_v7  ;;  %3672 = vst [vmem:[#allocation28_spill] sm:$0xff] %v2272_v8  ;;  %v2276_v10 = vld [vmem:[#allocation8 + $0x48] sm:$0xff]  ;;  %v2278_v11 = vld [vmem:[#allocation8 + $0x50] sm:$0xff]  ;;  %s2765_s17 = sld [smem:[#allocation7]]  ;;  %s2799_s0 = sld [smem:[#allocation7 + $0x1]] }
  0x45   :  { %3673 = vst [vmem:[#allocation29_spill] sm:$0xff] %v2274_v9  ;;  %3674 = vst [vmem:[#allocation30_spill] sm:$0xff] %v2276_v10  ;;  %v2280_v12 = vld [vmem:[#allocation8 + $0x80] sm:$0xff]  ;;  %v2282_v14 = vld [vmem:[#allocation8 + $0x58] sm:$0xff]  ;;  %s2873_s18 = sld [smem:[#allocation7 + $0x2]]  ;;  %s2951_s19 = sld [smem:[#allocation7 + $0x3]] }
  0x46   :  { %v157_v6 = vstv %s156_s10  ;;  %3675 = vst [vmem:[#allocation31_spill] sm:$0xff] %v2278_v11  ;;  %3676 = vst [vmem:[#allocation32_spill] sm:$0xff] %v2280_v12  ;;  %v225_v13 = vstv %s1462_s11  ;;  %v2284_v15 = vld [vmem:[#allocation8 + $0x60] sm:$0xff]  ;;  %v2286_v16 = vld [vmem:[#allocation8 + $0x88] sm:$0xff]  ;;  %s3089_s22 = sld [smem:[#allocation7 + $0x80]]  ;;  %s3137_s23 = sld [smem:[#allocation7 + $0x81]] }
  0x47   :  { %3677 = vst [vmem:[#allocation33_spill] sm:$0xff] %v2282_v14  ;;  %3678 = vst [vmem:[#allocation34_spill] sm:$0xff] %v2284_v15  ;;  %v158_v17 = vmul.f32 %v157_v6, %v2254_v0  ;;  %v159_v18 = vmul.f32 %v157_v6, %v2256_v1  ;;  %v160_v19 = vmul.f32 %v157_v6, %v2258_v2  ;;  %v2291_v20 = vld [vmem:[#allocation8 + $0x68] sm:$0xff]  ;;  %v2293_v21 = vld [vmem:[#allocation8 + $0x70] sm:$0xff]  ;;  %v2331_v47 = vstv %s2260_s12  ;;  %s2169_s24 = smov [#allocation11]   ;;  %s2170_s26 = smov [#allocation12]  }
  0x48   :  { %3679 = vst [vmem:[#allocation35_spill] sm:$0xff] %v2286_v16  ;;  %3680 = vst [vmem:[#allocation36_spill] sm:$0xff] %v2291_v20  ;;  %v2295_v22 = vld [vmem:[#allocation8 + $0x90] sm:$0xff]  ;;  %v161_v23 = vmul.f32 %v157_v6, %v2262_v3  ;;  %v162_v24 = vmul.f32 %v157_v6, %v2264_v4  ;;  %v163_v25 = vmul.f32 %v157_v6, %v2266_v5  ;;  %v2301_v27 = vld [vmem:[#allocation8 + $0x78] sm:$0xff]  ;;  %v2343_v54 = vstv %s2268_s3  ;;  %s3141_s25 = sshll.u32 %s2169_s24, 4  ;;  %s3147_s27 = sshll.u32 %s2170_s26, 4  ;;  %s3165_s25 = int_to_ptr.vmem [resolvable:$true] %s3141_s25  ;;  %s3177_s27 = int_to_ptr.vmem [resolvable:$true] %s3147_s27 }
  0x49   :  { %3681 = vst [vmem:[#allocation37_spill] sm:$0xff] %v2293_v21  ;;  %3682 = vst [vmem:[#allocation38_spill] sm:$0xff] %v2295_v22  ;;  %v164_v26 = vmul.f32 %v157_v6, %v2270_v7  ;;  %v2303_v28 = vld [vmem:[#allocation8 + $0x98] sm:$0xff]  ;;  %v2305_v29 = vld [vmem:[#allocation8 + $0xa0] sm:$0xff]  ;;  %v165_v30 = vmul.f32 %v157_v6, %v2272_v8  ;;  %v166_v31 = vmul.f32 %v157_v6, %v2274_v9  ;;  %s3154_s28 = sld [smem:[#allocation7 + $0x82]]  ;;  %s2085_s29 = scalar_lea.vmem %s3165_s25, 4096 }
  0x4a   :  { %3683 = vst [vmem:[#allocation39_spill] sm:$0xff] %v2301_v27  ;;  %3684 = vst [vmem:[#allocation40_spill] sm:$0xff] %v2303_v28  ;;  %v167_v32 = vmul.f32 %v157_v6, %v2276_v10  ;;  %v226_v33 = vmul.f32 %v225_v13, %v2280_v12  ;;  %v2311_v34 = vld [vmem:[#allocation8 + $0xa8] sm:$0xff]  ;;  %v2313_v35 = vld [vmem:[#allocation8 + $0xb0] sm:$0xff]  ;;  %v168_v37 = vmul.f32 %v157_v6, %v2278_v11  ;;  %p2086_p10 = scmp.ne.s32.totalorder %s3165_s25, %s2085_s29  ;;  %p2090_p11 = scmp.lt.s32.totalorder %s3165_s25, %s3165_s25 }
  0x4b   :  { %3685 = vst [vmem:[#allocation41_spill] sm:$0xff] %v2305_v29  ;;  %3686 = vst [vmem:[#allocation42_spill] sm:$0xff] %v2311_v34  ;;  %v2315_v36 = vld [vmem:[#allocation8 + $0xb8] sm:$0xff]  ;;  %v169_v38 = vmul.f32 %v157_v6, %v2282_v14  ;;  %v170_v39 = vmul.f32 %v157_v6, %v2284_v15  ;;  %v227_v40 = vmul.f32 %v225_v13, %v2286_v16  ;;  %v2321_v41 = vld [vmem:[#allocation8 + $0xc0] sm:$0xff]  ;;  %p2091_p12 = scmp.lt.s32.totalorder %s2085_s29, %s2085_s29 }
  0x4c   :  { %3687 = vst [vmem:[#allocation43_spill] sm:$0xff] %v2313_v35  ;;  %3688 = vst [vmem:[#allocation44_spill] sm:$0xff] %v2315_v36  ;;  %v2323_v42 = vld [vmem:[#allocation8 + $0xc8] sm:$0xff]  ;;  %v2325_v43 = vld [vmem:[#allocation8 + $0xd0] sm:$0xff]  ;;  %v171_v44 = vmul.f32 %v157_v6, %v2291_v20  ;;  %v172_v45 = vmul.f32 %v157_v6, %v2293_v21  ;;  %v228_v46 = vmul.f32 %v225_v13, %v2295_v22 }
  0x4d   :  { %3689 = vst [vmem:[#allocation45_spill] sm:$0xff] %v2321_v41  ;;  %3690 = vst [vmem:[#allocation46_spill] sm:$0xff] %v2323_v42  ;;  %v2333_v48 = vld [vmem:[#allocation8 + $0xd8] sm:$0xff]  ;;  %v2335_v49 = vld [vmem:[#allocation8 + $0xe0] sm:$0xff]  ;;  %v173_v51 = vmul.f32 %v157_v6, %v2301_v27  ;;  %v229_v52 = vmul.f32 %v225_v13, %v2303_v28  ;;  %v230_v53 = vmul.f32 %v225_v13, %v2305_v29  ;;  %p2092_p13 = por %p2091_p12, %p2090_p11 }
  0x4e   :  { %3691 = vst [vmem:[#allocation47_spill] sm:$0xff] %v2325_v43  ;;  %3692 = vst [vmem:[#allocation48_spill] sm:$0xff] %v2333_v48  ;;  %v2337_v50 = vld [vmem:[#allocation8 + $0xe8] sm:$0xff]  ;;  %v2345_v55 = vld [vmem:[#allocation8 + $0xf0] sm:$0xff]  ;;  %v231_v57 = vmul.f32 %v225_v13, %v2311_v34  ;;  %v232_v58 = vmul.f32 %v225_v13, %v2313_v35  ;;  %v233_v59 = vmul.f32 %v225_v13, %v2315_v36 }
  0x4f   :  { %3693 = vst [vmem:[#allocation49_spill] sm:$0xff] %v2335_v49  ;;  %3694 = vst [vmem:[#allocation50_spill] sm:$0xff] %v2337_v50  ;;  %v2347_v56 = vld [vmem:[#allocation8 + $0xf8] sm:$0xff]  ;;  %v242_v60 = vadd.f32 %v226_v33, %v158_v17  ;;  %v2352_v61 = vld [vmem:[#allocation8 + $0x100] sm:$0xff]  ;;  %v234_v63 = vmul.f32 %v225_v13, %v2321_v41  ;;  %v235_v6 = vmul.f32 %v225_v13, %v2323_v42  ;;  %p2093_p0 = pnand %p2092_p13, %p2086_p10 }
  0x50   :  { %3695 = vst [vmem:[#allocation51_spill] sm:$0xff] %v2345_v55  ;;  %3696 = vst [vmem:[#allocation52_spill] sm:$0xff] %v2347_v56  ;;  %v2354_v62 = vld [vmem:[#allocation8 + $0x108] sm:$0xff]  ;;  %v236_v29 = vmul.f32 %v225_v13, %v2325_v43  ;;  %v243_v28 = vadd.f32 %v227_v40, %v159_v18  ;;  %v2359_v22 = vld [vmem:[#allocation8 + $0x110] sm:$0xff]  ;;  %v237_v34 = vmul.f32 %v225_v13, %v2333_v48 }
  0x51   :  { %3697 = vst [vmem:[#allocation53_spill] sm:$0xff] %v2352_v61  ;;  %3698 = vst [vmem:[#allocation54_spill] sm:$0xff] %v2354_v62  ;;  %v238_v35 = vmul.f32 %v225_v13, %v2335_v49  ;;  %v239_v36 = vmul.f32 %v225_v13, %v2337_v50  ;;  %v244_v17 = vadd.f32 %v228_v46, %v160_v19  ;;  %v2364_v33 = vld [vmem:[#allocation8 + $0x118] sm:$0xff]  ;;  %v2368_v27 = vld [vmem:[#allocation8 + $0x120] sm:$0xff] }
  0x52   :  { %3699 = vst [vmem:[#allocation55_spill] sm:$0xff] %v2359_v22  ;;  %3700 = vst [vmem:[#allocation56_spill] sm:$0xff] %v2364_v33  ;;  %v240_v16 = vmul.f32 %v225_v13, %v2345_v55  ;;  %v241_v41 = vmul.f32 %v225_v13, %v2347_v56  ;;  %v245_v12 = vadd.f32 %v229_v52, %v161_v23  ;;  %v2374_v50 = vld [vmem:[#allocation8 + $0x128] sm:$0xff]  ;;  %v2376_v19 = vld [vmem:[#allocation8 + $0x130] sm:$0xff] }
  0x53   :  { %v246_v42 = vadd.f32 %v230_v53, %v162_v24  ;;  %3701 = vst [vmem:[#allocation57_spill] sm:$0xff] %v2368_v27  ;;  %v247_v18 = vadd.f32 %v231_v57, %v163_v25  ;;  %v248_v40 = vadd.f32 %v232_v58, %v164_v26  ;;  %v294_v48 = vmul.f32 %v2331_v47, %v2352_v61  ;;  %v2380_v23 = vld [vmem:[#allocation8 + $0x180] sm:$0xff]  ;;  %v2382_v24 = vld [vmem:[#allocation8 + $0x188] sm:$0xff]  ;;  %v2384_v25 = vld [vmem:[#allocation8 + $0x190] sm:$0xff] }
  0x54   :  { %v295_v49 = vmul.f32 %v2331_v47, %v2354_v62  ;;  %3702 = vst [vmem:[#allocation58_spill] sm:$0xff] %v2374_v50  ;;  %3703 = vst [vmem:[#allocation59_spill] sm:$0xff] %v2376_v19  ;;  %v249_v46 = vadd.f32 %v233_v59, %v165_v30  ;;  %v250_v55 = vadd.f32 %v234_v63, %v166_v31  ;;  %v2390_v58 = vld [vmem:[#allocation8 + $0x138] sm:$0xff]  ;;  %v2392_v30 = vld [vmem:[#allocation8 + $0x140] sm:$0xff] }
  0x55   :  { %v251_v43 = vadd.f32 %v235_v6, %v167_v32  ;;  %v296_v13 = vmul.f32 %v2331_v47, %v2359_v22  ;;  %3704 = vst [vmem:[#allocation60_spill] sm:$0xff] %v2380_v23  ;;  %3705 = vst [vmem:[#allocation61_spill] sm:$0xff] %v2382_v24  ;;  %v252_v26 = vadd.f32 %v236_v29, %v168_v37  ;;  %v2394_v31 = vld [vmem:[#allocation8 + $0x198] sm:$0xff]  ;;  %v2408_v37 = vld [vmem:[#allocation8 + $0x1a0] sm:$0xff] }
  0x56   :  { %3706 = vst [vmem:[#allocation62_spill] sm:$0xff] %v2384_v25  ;;  %v253_v52 = vadd.f32 %v237_v34, %v169_v38  ;;  %v2386_v53 = vadd.f32 %v238_v35, %v170_v39  ;;  %v297_v57 = vmul.f32 %v2331_v47, %v2364_v33  ;;  %3707 = vst [vmem:[#allocation63_spill] sm:$0xff] %v2390_v58  ;;  %v2404_v34 = vld [vmem:[#allocation8 + $0x148] sm:$0xff]  ;;  %v2406_v35 = vld [vmem:[#allocation8 + $0x150] sm:$0xff] }
  0x57   :  { %3708 = vst [vmem:[#allocation64_spill] sm:$0xff] %v2392_v30  ;;  %3709 = vst [vmem:[#allocation65_spill] sm:$0xff] %v2394_v31  ;;  %v2396_v32 = vadd.f32 %v239_v36, %v171_v44  ;;  %v2398_v59 = vadd.f32 %v240_v16, %v172_v45  ;;  %v2400_v63 = vadd.f32 %v241_v41, %v173_v51  ;;  %v2414_v44 = vld [vmem:[#allocation8 + $0x158] sm:$0xff]  ;;  %v2416_v41 = vld [vmem:[#allocation8 + $0x160] sm:$0xff] }
  0x58   :  { %v298_v29 = vmul.f32 %v2331_v47, %v2368_v27  ;;  %3710 = vst [vmem:[#allocation66_spill] sm:$0xff] %v2404_v34  ;;  %3711 = vst [vmem:[#allocation67_spill] sm:$0xff] %v2406_v35  ;;  %v299_v38 = vmul.f32 %v2331_v47, %v2374_v50  ;;  %v300_v36 = vmul.f32 %v2331_v47, %v2376_v19  ;;  %v2418_v45 = vld [vmem:[#allocation8 + $0x1a8] sm:$0xff]  ;;  %v2444_v19 = vld [vmem:[#allocation8 + $0x178] sm:$0xff] }
  0x59   :  { %3712 = vst [vmem:[#allocation68_spill] sm:$0xff] %v2408_v37  ;;  %v310_v39 = vadd.f32 %v294_v48, %v242_v60  ;;  %v311_v16 = vadd.f32 %v295_v49, %v243_v28  ;;  %3713 = vst [vmem:[#allocation69_spill] sm:$0xff] %v2414_v44  ;;  %v312_v51 = vadd.f32 %v296_v13, %v244_v17  ;;  %v2426_v33 = vld [vmem:[#allocation8 + $0x168] sm:$0xff]  ;;  %v2434_v17 = vld [vmem:[#allocation8 + $0x170] sm:$0xff] }
  0x5a   :  { %3714 = vst [vmem:[#allocation70_spill] sm:$0xff] %v2416_v41  ;;  %3715 = vst [vmem:[#allocation71_spill] sm:$0xff] %v2418_v45  ;;  %v362_v6 = vmul.f32 %v2343_v54, %v2380_v23  ;;  %v363_v27 = vmul.f32 %v2343_v54, %v2382_v24  ;;  %v364_v50 = vmul.f32 %v2343_v54, %v2384_v25  ;;  %v2436_v13 = vld [vmem:[#allocation8 + $0x1b0] sm:$0xff] }
  0x5b   :  { %3716 = vst [vmem:[#allocation72_spill] sm:$0xff] %v2426_v33  ;;  %v301_v28 = vmul.f32 %v2331_v47, %v2390_v58  ;;  %v302_v48 = vmul.f32 %v2331_v47, %v2392_v30  ;;  %v313_v49 = vadd.f32 %v297_v57, %v245_v12  ;;  %v365_v60 = vmul.f32 %v2343_v54, %v2394_v31 }
  0x5c   :  { %v303_v24 = vmul.f32 %v2331_v47, %v2404_v34  ;;  %v304_v25 = vmul.f32 %v2331_v47, %v2406_v35  ;;  %v314_v23 = vadd.f32 %v298_v29, %v246_v42  ;;  %v366_v58 = vmul.f32 %v2343_v54, %v2408_v37  ;;  %v2452_v34 = vld [vmem:[#allocation8 + $0x1b8] sm:$0xff] }
  0x5d   :  { %v305_v12 = vmul.f32 %v2331_v47, %v2414_v44  ;;  %v306_v57 = vmul.f32 %v2331_v47, %v2416_v41  ;;  %v315_v30 = vadd.f32 %v299_v38, %v247_v18  ;;  %v367_v31 = vmul.f32 %v2343_v54, %v2418_v45  ;;  %v2460_v18 = vld [vmem:[#allocation8 + $0x1c0] sm:$0xff] }
  0x5e   :  { %v307_v42 = vmul.f32 %v2331_v47, %v2426_v33  ;;  %v378_v29 = vadd.f32 %v362_v6, %v310_v39  ;;  %v379_v35 = vadd.f32 %v363_v27, %v311_v16  ;;  %v380_v37 = vadd.f32 %v364_v50, %v312_v51  ;;  %v2464_v33 = vld [vmem:[#allocation8 + $0x1c8] sm:$0xff] }
  0x5f   :  { %v308_v22 = vmul.f32 %v2331_v47, %v2434_v17  ;;  %v316_v62 = vadd.f32 %v300_v36, %v248_v40  ;;  %v368_v44 = vmul.f32 %v2343_v54, %v2436_v13  ;;  %v381_v41 = vadd.f32 %v365_v60, %v313_v49  ;;  %v2470_v49 = vld [vmem:[#allocation8 + $0x1d0] sm:$0xff] }
  0x60   :  { %v309_v38 = vmul.f32 %v2331_v47, %v2444_v19  ;;  %v317_v45 = vadd.f32 %v301_v28, %v249_v46  ;;  %v318_v61 = vadd.f32 %v302_v48, %v250_v55  ;;  %v382_v56 = vadd.f32 %v366_v58, %v314_v23  ;;  %3717 = vst [vmem:[#allocation73_spill] sm:$0xff] %v2470_v49  ;;  %v2472_v47 = vld [vmem:[#allocation8 + $0x1d8] sm:$0xff]  ;;  %v2474_v55 = vld [vmem:[#allocation8 + $0x1e0] sm:$0xff] }
  0x61   :  { %v319_v27 = vadd.f32 %v303_v24, %v251_v43  ;;  %v320_v50 = vadd.f32 %v304_v25, %v252_v26  ;;  %v369_v39 = vmul.f32 %v2343_v54, %v2452_v34  ;;  %v383_v40 = vadd.f32 %v367_v31, %v315_v30  ;;  %3718 = vst [vmem:[#allocation74_spill] sm:$0xff] %v2472_v47  ;;  %v2479_v25 = vld [vmem:[#allocation8 + $0x1e8] sm:$0xff]  ;;  %v2483_v30 = vld [vmem:[#allocation8 + $0x1f0] sm:$0xff]  ;;  %v2485_v31 = vld [vmem:[#allocation8 + $0x1f8] sm:$0xff] }
  0x62   :  { %v321_v36 = vadd.f32 %v305_v12, %v253_v52  ;;  %v428_v16 = vmul.f32 1.442695, %v378_v29  ;;  %v430_v51 = vmul.f32 1.442695, %v379_v35  ;;  %v432_v6 = vmul.f32 1.442695, %v380_v37 }
  0x63   :  { %3719 = vst [vmem:[#allocation75_spill] sm:$0xff] %v2474_v55  ;;  %v322_v46 = vadd.f32 %v306_v57, %v2386_v53  ;;  %v370_v43 = vmul.f32 %v2343_v54, %v2460_v18  ;;  %v384_v23 = vadd.f32 %v368_v44, %v316_v62  ;;  %v434_v24 = vmul.f32 1.442695, %v381_v41  ;;  %3720 = vst [vmem:[#allocation76_spill] sm:$0xff] %v2479_v25 }
  0x64   :  { %v323_v26 = vadd.f32 %v307_v42, %v2396_v32  ;;  %v324_v52 = vadd.f32 %v308_v22, %v2398_v59  ;;  %1803 = vpow2.f32 %v428_v16  ;;  %v436_v58 = vmul.f32 1.442695, %v382_v56  ;;  %3721 = vst [vmem:[#allocation77_spill] sm:$0xff] %v2483_v30  ;;  %3722 = vst [vmem:[#allocation78_spill] sm:$0xff] %v2485_v31  ;;  %v2507_v16 = vld [vmem:[#allocation9 + $0x8] sm:$0xff] }
  0x65   :  { %v371_v53 = vmul.f32 %v2343_v54, %v2464_v33  ;;  %v385_v35 = vadd.f32 %v369_v39, %v317_v45  ;;  %1805 = vpow2.f32 %v430_v51  ;;  %v438_v37 = vmul.f32 1.442695, %v383_v40  ;;  %v2503_v40 = vld [vmem:[#allocation9] sm:$0xff]  ;;  %3724 = vst [vmem:[#allocation80_spill] sm:$0xff] %v2507_v16 }
  0x66   :  { %v372_v62 = vmul.f32 %v2343_v54, %v2470_v49  ;;  %v373_v32 = vmul.f32 %v2343_v54, %v2472_v47  ;;  %v374_v22 = vmul.f32 %v2343_v54, %v2474_v55  ;;  %1807 = vpow2.f32 %v432_v6  ;;  %3723 = vst [vmem:[#allocation79_spill] sm:$0xff] %v2503_v40 }
  0x67   :  { %v375_v56 = vmul.f32 %v2343_v54, %v2479_v25  ;;  %v386_v59 = vadd.f32 %v370_v43, %v318_v61  ;;  %1809 = vpow2.f32 %v434_v24  ;;  %v440_v44 = vmul.f32 1.442695, %v384_v23 }
  0x68   :  { %v325_v41 = vadd.f32 %v309_v38, %v2400_v63  ;;  %v376_v45 = vmul.f32 %v2343_v54, %v2483_v30  ;;  %v377_v28 = vmul.f32 %v2343_v54, %v2485_v31  ;;  %1811 = vpow2.f32 %v436_v58  ;;  %v2509_v54 = vld [vmem:[#allocation9 + $0x10] sm:$0xff] }
  0x69   :  { %v387_v48 = vadd.f32 %v371_v53, %v319_v27  ;;  %1813 = vpow2.f32 %v438_v37  ;;  %v442_v60 = vmul.f32 1.442695, %v385_v35  ;;  %v388_v12 = vadd.f32 %v372_v62, %v320_v50  ;;  %3725 = vst [vmem:[#allocation81_spill] sm:$0xff] %v2509_v54  ;;  %v2511_v27 = vld [vmem:[#allocation9 + $0x18] sm:$0xff] }
  0x6a   :  { %v389_v57 = vadd.f32 %v373_v32, %v321_v36  ;;  %v783_v42 = vstv %s2468_s13  ;;  %v390_v29 = vadd.f32 %v374_v22, %v322_v46  ;;  %v391_v39 = vadd.f32 %v375_v56, %v323_v26  ;;  %3726 = vst [vmem:[#allocation82_spill] sm:$0xff] %v2511_v27  ;;  %v2534_v22 = vld [vmem:[#allocation9 + $0x20] sm:$0xff] }
  0x6b   :  { %1815 = vpow2.f32 %v440_v44  ;;  %v444_v61 = vmul.f32 1.442695, %v386_v59  ;;  %v392_v63 = vadd.f32 %v376_v45, %v324_v52  ;;  %v393_v38 = vadd.f32 %v377_v28, %v325_v41  ;;  %3729 = vst [vmem:[#allocation85_spill] sm:$0xff] %v2534_v22 }
  0x6c   :  { %1817 = vpow2.f32 %v442_v60  ;;  %v446_v50 = vmul.f32 1.442695, %v387_v48  ;;  %v448_v51 = vmul.f32 1.442695, %v388_v12  ;;  %v450_v6 = vmul.f32 1.442695, %v389_v57 }
  0x6d   :  { %v2514_v46 = vmul.f32 %v783_v42, %v2254_v0  ;;  %v2517_v43 = vmul.f32 %v783_v42, %v2256_v1  ;;  %1819 = vpow2.f32 %v444_v61  ;;  %v452_v24 = vmul.f32 1.442695, %v390_v29  ;;  %v2556_v57 = vld [vmem:[#allocation9 + $0x28] sm:$0xff] }
  0x6e   :  { %v1804_v36 = vpop.eup %1803  ;;  %v454_v26 = vmul.f32 1.442695, %v391_v39  ;;  %v456_v53 = vmul.f32 1.442695, %v392_v63  ;;  %v2526_v35 = vmul.f32 1.442695, %v393_v38  ;;  %v2532_v62 = vmul.f32 %v783_v42, %v2258_v2 }
  0x6f   :  { %v1806_v23 = vpop.eup %1805  ;;  %v2522_v52 = vmul.f32 %v1804_v36, %v2503_v40  ;;  %1821 = vpow2.f32 %v446_v50  ;;  %v2540_v59 = vmul.f32 %v783_v42, %v2262_v3  ;;  %v2543_v44 = vmul.f32 %v783_v42, %v2264_v4  ;;  %3732 = vst [vmem:[#allocation88_spill] sm:$0xff] %v2556_v57  ;;  %v3745_v3 = vld [vmem:[#allocation42_spill] sm:$0xff]  ;;  %v3757_v40 = vld [vmem:[#allocation52_spill] sm:$0xff] }
  0x70   :  { %v1808_v58 = vpop.eup %1807  ;;  %v2529_v37 = vmul.f32 %v1806_v23, %v2507_v16  ;;  %v2551_v48 = vmul.f32 %v783_v42, %v2266_v5  ;;  %v2554_v60 = vmul.f32 %v783_v42, %v2270_v7  ;;  %1823 = vpow2.f32 %v448_v51  ;;  %v2575_v23 = vld [vmem:[#allocation9 + $0x30] sm:$0xff]  ;;  %v2622_v1 = vld [vmem:[#allocation9 + $0x48] sm:$0xff] }
  0x71   :  { %3727 = vst [vmem:[#allocation83_spill] sm:$0xff] %v2522_v52  ;;  %v1810_v32 = vpop.eup %1809  ;;  %v2537_v56 = vmul.f32 %v1808_v58, %v2509_v54  ;;  %v2559_v29 = vmul.f32 %v783_v42, %v2272_v8  ;;  %v2562_v39 = vmul.f32 %v783_v42, %v2274_v9  ;;  %v2565_v61 = vmul.f32 %v783_v42, %v2276_v10  ;;  %v3742_v8 = vld [vmem:[#allocation38_spill] sm:$0xff]  ;;  %v2633_v54 = vld [vmem:[#allocation9 + $0x50] sm:$0xff] }
  0x72   :  { %3728 = vst [vmem:[#allocation84_spill] sm:$0xff] %v2529_v37  ;;  %v1812_v41 = vpop.eup %1811  ;;  %v2546_v45 = vmul.f32 %v1810_v32, %v2511_v27  ;;  %v476_v28 = vadd.f32 %v2529_v37, %v2522_v52  ;;  %v2572_v50 = vmul.f32 %v783_v42, %v2278_v11  ;;  %v851_v36 = vstv %s2505_s14  ;;  %3734 = vst [vmem:[#allocation90_spill] sm:$0xff] %v2575_v23  ;;  %v3736_v52 = vld [vmem:[#allocation39_spill] sm:$0xff] }
  0x73   :  { %3730 = vst [vmem:[#allocation86_spill] sm:$0xff] %v2537_v56  ;;  %v1814_v12 = vpop.eup %1813  ;;  %v2568_v63 = vmul.f32 %v1812_v41, %v2534_v22  ;;  %1825 = vpow2.f32 %v450_v6  ;;  %v2578_v58 = vmul.f32 %v783_v42, %v2282_v14  ;;  %v2581_v32 = vmul.f32 %v783_v42, %v2284_v15  ;;  %v2596_v14 = vld [vmem:[#allocation9 + $0x38] sm:$0xff]  ;;  %3748 = vst [vmem:[#allocation38_spill] sm:$0xff] %v2622_v1  ;;  %v3756_v16 = vld [vmem:[#allocation51_spill] sm:$0xff] }
  0x74   :  { %3731 = vst [vmem:[#allocation87_spill] sm:$0xff] %v2546_v45  ;;  %v477_v38 = vadd.f32 %v476_v28, %v2537_v56  ;;  %v2584_v41 = vmul.f32 %v783_v42, %v2291_v20  ;;  %v2587_v28 = vmul.f32 %v1814_v12, %v2556_v57  ;;  %v2591_v37 = vmul.f32 %v783_v42, %v2293_v21  ;;  %v3738_v15 = vld [vmem:[#allocation32_spill] sm:$0xff]  ;;  %v3740_v21 = vld [vmem:[#allocation35_spill] sm:$0xff] }
  0x75   :  { %3733 = vst [vmem:[#allocation89_spill] sm:$0xff] %v2568_v63  ;;  %v1816_v51 = vpop.eup %1815  ;;  %v2594_v11 = vmul.f32 %v783_v42, %v3736_v52  ;;  %3737 = vst [vmem:[#allocation92_spill] sm:$0xff] %v2596_v14  ;;  %1827 = vpow2.f32 %v452_v24  ;;  %v852_v10 = vmul.f32 %v851_v36, %v3738_v15  ;;  %v2600_v9 = vstv %s2519_s15  ;;  %v2610_v52 = vld [vmem:[#allocation9 + $0x40] sm:$0xff]  ;;  %v3743_v24 = vld [vmem:[#allocation40_spill] sm:$0xff] }
  0x76   :  { %3735 = vst [vmem:[#allocation91_spill] sm:$0xff] %v2587_v28  ;;  %v478_v56 = vadd.f32 %v477_v38, %v2546_v45  ;;  %v1818_v6 = vpop.eup %1817  ;;  %v2603_v20 = vstv %s2524_s16  ;;  %1829 = vpow2.f32 %v454_v26  ;;  %v2606_v12 = vmul.f32 %v1816_v51, %v2575_v23  ;;  %3741 = vst [vmem:[#allocation35_spill] sm:$0xff] %v2610_v52  ;;  %v3744_v15 = vld [vmem:[#allocation41_spill] sm:$0xff]  ;;  %v3746_v23 = vld [vmem:[#allocation43_spill] sm:$0xff] }
  0x77   :  { %v853_v45 = vmul.f32 %v851_v36, %v3740_v21  ;;  %v1820_v42 = vpop.eup %1819  ;;  %v854_v7 = vmul.f32 %v851_v36, %v3742_v8  ;;  %v855_v5 = vmul.f32 %v851_v36, %v3743_v24  ;;  %v856_v4 = vmul.f32 %v851_v36, %v3744_v15  ;;  %v3749_v8 = vld [vmem:[#allocation45_spill] sm:$0xff]  ;;  %v3750_v24 = vld [vmem:[#allocation46_spill] sm:$0xff]  ;;  %v3751_v15 = vld [vmem:[#allocation47_spill] sm:$0xff]  ;;  %3754 = vst [vmem:[#allocation40_spill] sm:$0xff] %v2633_v54 }
  0x78   :  { %3739 = vst [vmem:[#allocation32_spill] sm:$0xff] %v2606_v12  ;;  %v479_v38 = vadd.f32 %v478_v56, %v2568_v63  ;;  %v857_v2 = vmul.f32 %v851_v36, %v3745_v3  ;;  %v2617_v26 = vmul.f32 %v1818_v6, %v2596_v14  ;;  %v858_v56 = vmul.f32 %v851_v36, %v3746_v23  ;;  %v3747_v63 = vld [vmem:[#allocation44_spill] sm:$0xff]  ;;  %v3753_v23 = vld [vmem:[#allocation49_spill] sm:$0xff] }
  0x79   :  { %v859_v21 = vmul.f32 %v851_v36, %v3747_v63  ;;  %v1822_v57 = vpop.eup %1821  ;;  %1831 = vpow2.f32 %v456_v53  ;;  %v860_v0 = vmul.f32 %v851_v36, %v3749_v8  ;;  %v861_v22 = vmul.f32 %v851_v36, %v3750_v24  ;;  %v3755_v53 = vld [vmem:[#allocation50_spill] sm:$0xff] }
  0x7a   :  { %v480_v51 = vadd.f32 %v479_v38, %v2587_v28  ;;  %v862_v27 = vmul.f32 %v851_v36, %v3751_v15  ;;  %v2628_v3 = vmul.f32 %v1820_v42, %v2610_v52  ;;  %v3752_v38 = vld [vmem:[#allocation48_spill] sm:$0xff]  ;;  %v864_v14 = vmul.f32 %v851_v36, %v3753_v23  ;;  %v1824_v63 = vpop.eup %1823 }
  0x7b   :  { %v863_v28 = vmul.f32 %v851_v36, %v3752_v38  ;;  %1833 = vpow2.f32 %v2526_v35  ;;  %v865_v8 = vmul.f32 %v851_v36, %v3755_v53  ;;  %v866_v24 = vmul.f32 %v851_v36, %v3756_v16  ;;  %v2647_v52 = vld [vmem:[#allocation9 + $0x58] sm:$0xff] }
  0x7c   :  { %v481_v6 = vadd.f32 %v480_v51, %v2606_v12  ;;  %v2639_v15 = vmul.f32 %v851_v36, %v3757_v40  ;;  %v2642_v42 = vmul.f32 %v1822_v57, %v2622_v1  ;;  %v868_v38 = vadd.f32 %v852_v10, %v2514_v46  ;;  %3758 = vst [vmem:[#allocation41_spill] sm:$0xff] %v2647_v52 }
  0x7d   :  { %v869_v23 = vadd.f32 %v853_v45, %v2517_v43  ;;  %v1826_v12 = vpop.eup %1825  ;;  %v870_v35 = vadd.f32 %v854_v7, %v2532_v62  ;;  %v871_v53 = vadd.f32 %v855_v5, %v2540_v59  ;;  %v872_v16 = vadd.f32 %v856_v4, %v2543_v44  ;;  %v2659_v45 = vld [vmem:[#allocation9 + $0x60] sm:$0xff]  ;;  %v2670_v44 = vld [vmem:[#allocation9 + $0x68] sm:$0xff] }
  0x7e   :  { %v482_v51 = vadd.f32 %v481_v6, %v2617_v26  ;;  %v873_v36 = vadd.f32 %v857_v2, %v2551_v48  ;;  %v2654_v57 = vmul.f32 %v1824_v63, %v2633_v54  ;;  %v874_v10 = vadd.f32 %v858_v56, %v2554_v60  ;;  %3759 = vst [vmem:[#allocation42_spill] sm:$0xff] %v2659_v45  ;;  %v3760_v2 = vld [vmem:[#allocation53_spill] sm:$0xff]  ;;  %v3764_v56 = vld [vmem:[#allocation56_spill] sm:$0xff] }
  0x7f   :  { %v875_v46 = vadd.f32 %v859_v21, %v2559_v29  ;;  %v1828_v43 = vpop.eup %1827  ;;  %v876_v7 = vadd.f32 %v860_v0, %v2562_v39  ;;  %v2663_v5 = vadd.f32 %v861_v22, %v2565_v61  ;;  %v2666_v4 = vadd.f32 %v862_v27, %v2572_v50  ;;  %3761 = vst [vmem:[#allocation43_spill] sm:$0xff] %v2670_v44  ;;  %v3762_v0 = vld [vmem:[#allocation54_spill] sm:$0xff]  ;;  %v3763_v61 = vld [vmem:[#allocation55_spill] sm:$0xff]  ;;  %v3765_v63 = vld [vmem:[#allocation57_spill] sm:$0xff] }
  0x80   :  { %v483_v6 = vadd.f32 %v482_v51, %v2628_v3  ;;  %v920_v62 = vmul.f32 %v2600_v9, %v3760_v2  ;;  %v1830_v59 = vpop.eup %1829  ;;  %v2673_v48 = vmul.f32 %v1826_v12, %v2647_v52  ;;  %v2677_v29 = vadd.f32 %v863_v28, %v2578_v58  ;;  %v3767_v51 = vld [vmem:[#allocation58_spill] sm:$0xff]  ;;  %v3772_v54 = vld [vmem:[#allocation65_spill] sm:$0xff] }
  0x81   :  { %v921_v22 = vmul.f32 %v2600_v9, %v3762_v0  ;;  %v2682_v27 = vadd.f32 %v864_v14, %v2581_v32  ;;  %v2685_v39 = vadd.f32 %v865_v8, %v2584_v41  ;;  %v922_v50 = vmul.f32 %v2600_v9, %v3763_v61  ;;  %v2700_v41 = vld [vmem:[#allocation9 + $0x70] sm:$0xff]  ;;  %v3771_v52 = vld [vmem:[#allocation62_spill] sm:$0xff] }
  0x82   :  { %v484_v60 = vadd.f32 %v483_v6, %v2642_v42  ;;  %v923_v12 = vmul.f32 %v2600_v9, %v3764_v56  ;;  %v2692_v21 = vmul.f32 %v1828_v43, %v2659_v45  ;;  %v2696_v28 = vadd.f32 %v866_v24, %v2591_v37  ;;  %3766 = vst [vmem:[#allocation44_spill] sm:$0xff] %v2700_v41  ;;  %v3768_v56 = vld [vmem:[#allocation59_spill] sm:$0xff]  ;;  %v3769_v24 = vld [vmem:[#allocation60_spill] sm:$0xff] }
  0x83   :  { %v924_v14 = vmul.f32 %v2600_v9, %v3765_v63  ;;  %v1832_v32 = vpop.eup %1831  ;;  %v2703_v8 = vmul.f32 %v1830_v59, %v2670_v44  ;;  %v925_v6 = vmul.f32 %v2600_v9, %v3767_v51  ;;  %v926_v43 = vmul.f32 %v2600_v9, %v3768_v56  ;;  %v3770_v63 = vld [vmem:[#allocation61_spill] sm:$0xff]  ;;  %v2714_v45 = vld [vmem:[#allocation9 + $0x78] sm:$0xff] }
  0x84   :  { %v485_v58 = vadd.f32 %v484_v60, %v2654_v57  ;;  %v936_v61 = vadd.f32 %v920_v62, %v868_v38  ;;  %v937_v37 = vadd.f32 %v921_v22, %v869_v23  ;;  %v988_v0 = vmul.f32 %v2603_v20, %v3769_v24  ;;  %v3773_v56 = vld [vmem:[#allocation68_spill] sm:$0xff] }
  0x85   :  { %v989_v2 = vmul.f32 %v2603_v20, %v3770_v63  ;;  %v1834_v40 = vpop.eup %1833  ;;  %v938_v59 = vadd.f32 %v922_v50, %v870_v35  ;;  %v939_v44 = vadd.f32 %v923_v12, %v871_v53  ;;  %v990_v51 = vmul.f32 %v2603_v20, %v3771_v52  ;;  %v3774_v63 = vld [vmem:[#allocation63_spill] sm:$0xff]  ;;  %v3775_v35 = vld [vmem:[#allocation64_spill] sm:$0xff] }
  0x86   :  { %v486_v60 = vadd.f32 %v485_v58, %v2673_v48  ;;  %v991_v38 = vmul.f32 %v2603_v20, %v3772_v54  ;;  %v2721_v62 = vmul.f32 %v1832_v32, %v2700_v41  ;;  %v940_v22 = vadd.f32 %v924_v14, %v872_v16  ;;  %v3776_v12 = vld [vmem:[#allocation71_spill] sm:$0xff] }
  0x87   :  { %v992_v58 = vmul.f32 %v2603_v20, %v3773_v56  ;;  %v927_v24 = vmul.f32 %v2600_v9, %v3774_v63  ;;  %v928_v53 = vmul.f32 %v2600_v9, %v3775_v35  ;;  %v941_v50 = vadd.f32 %v925_v6, %v873_v36  ;;  %v3777_v6 = vld [vmem:[#allocation66_spill] sm:$0xff] }
  0x88   :  { %v487_v23 = vadd.f32 %v486_v60, %v2692_v21  ;;  %v993_v52 = vmul.f32 %v2603_v20, %v3776_v12  ;;  %v2733_v54 = vmul.f32 %v1834_v40, %v2714_v45  ;;  %v1004_v60 = vadd.f32 %v988_v0, %v936_v61  ;;  %v3778_v12 = vld [vmem:[#allocation67_spill] sm:$0xff] }
  0x89   :  { %v1005_v16 = vadd.f32 %v989_v2, %v937_v37  ;;  %v942_v14 = vadd.f32 %v926_v43, %v874_v10  ;;  %v994_v56 = vmul.f32 %v2603_v20, %v2436_v13  ;;  %v1006_v41 = vadd.f32 %v990_v51, %v938_v59 }
  0x8a   :  { %v488_v32 = vadd.f32 %v487_v23, %v2703_v8  ;;  %v1007_v63 = vadd.f32 %v991_v38, %v939_v44  ;;  %v883_v36 = vadd.f32 %v2639_v15, %v2594_v11  ;;  %v929_v35 = vmul.f32 %v2600_v9, %v3777_v6 }
  0x8b   :  { %v1008_v40 = vadd.f32 %v992_v58, %v940_v22  ;;  %v930_v23 = vmul.f32 %v2600_v9, %v3778_v12  ;;  %v943_v0 = vadd.f32 %v927_v24, %v875_v46  ;;  %v944_v2 = vadd.f32 %v928_v53, %v876_v7  ;;  %v3779_v22 = vld [vmem:[#allocation69_spill] sm:$0xff]  ;;  %v3781_v7 = vld [vmem:[#allocation72_spill] sm:$0xff] }
  0x8c   :  { %v489_v1 = vadd.f32 %v488_v32, %v2721_v62  ;;  %v1009_v10 = vadd.f32 %v993_v52, %v941_v50  ;;  %v995_v44 = vmul.f32 %v2603_v20, %v2452_v34  ;;  %v1054_v43 = vmul.f32 1.442695, %v1004_v60  ;;  %v3780_v52 = vld [vmem:[#allocation70_spill] sm:$0xff] }
  0x8d   :  { %v1056_v37 = vmul.f32 1.442695, %v1005_v16  ;;  %v996_v11 = vmul.f32 %v2603_v20, %v2460_v18  ;;  %v1010_v15 = vadd.f32 %v994_v56, %v942_v14  ;;  %v1058_v59 = vmul.f32 1.442695, %v1006_v41 }
  0x8e   :  { %v490_v61 = vadd.f32 %v489_v1, %v2733_v54  ;;  %v1060_v51 = vmul.f32 1.442695, %v1007_v63  ;;  %v931_v58 = vmul.f32 %v2600_v9, %v3779_v22  ;;  %1835 = vpow2.f32 %v1054_v43 }
  0x8f   :  { %v1062_v46 = vmul.f32 1.442695, %v1008_v40  ;;  %v932_v1 = vmul.f32 %v2600_v9, %v3780_v52  ;;  %v933_v24 = vmul.f32 %v2600_v9, %v3781_v7  ;;  %1837 = vpow2.f32 %v1056_v37 }
  0x90   :  { %v491_v38 = vrot.slane %v490_v61, 4  ;;  %v1064_v53 = vmul.f32 1.442695, %v1009_v10  ;;  %v934_v56 = vmul.f32 %v2600_v9, %v2434_v17  ;;  %v1011_v41 = vadd.f32 %v995_v44, %v943_v0 }
  0x91   :  { %1839 = vpow2.f32 %v1058_v59  ;;  %v935_v32 = vmul.f32 %v2600_v9, %v2444_v19  ;;  %v1012_v60 = vadd.f32 %v996_v11, %v944_v2  ;;  %v1066_v16 = vmul.f32 1.442695, %v1010_v15 }
  0x92   :  { %v492_v50 = vadd.f32 %v491_v38, %v490_v61  ;;  %1841 = vpow2.f32 %v1060_v51  ;;  %v945_v63 = vadd.f32 %v929_v35, %v2663_v5  ;;  %v946_v40 = vadd.f32 %v930_v23, %v2666_v4 }
  0x93   :  { %1843 = vpow2.f32 %v1062_v46  ;;  %v947_v10 = vadd.f32 %v931_v58, %v2677_v29  ;;  %v948_v61 = vadd.f32 %v932_v1, %v2682_v27  ;;  %v949_v43 = vadd.f32 %v933_v24, %v2685_v39 }
  0x94   :  { %v493_v14 = vrot.slane %v492_v50, 2  ;;  %1845 = vpow2.f32 %v1064_v53  ;;  %v997_v9 = vmul.f32 %v2603_v20, %v2464_v33  ;;  %v998_v2 = vmul.f32 %v2603_v20, %v2470_v49  ;;  %v3844_v49 = vld [vmem:[#allocation43_spill] sm:$0xff] }
  0x95   :  { %v1068_v5 = vmul.f32 1.442695, %v1011_v41  ;;  %v999_v4 = vmul.f32 %v2603_v20, %v2472_v47  ;;  %v1000_v29 = vmul.f32 %v2603_v20, %v2474_v55  ;;  %1847 = vpow2.f32 %v1066_v16  ;;  %v3786_v16 = vld [vmem:[#allocation81_spill] sm:$0xff] }
  0x96   :  { %v494_v0 = vadd.f32 %v493_v14, %v492_v50  ;;  %v1070_v27 = vmul.f32 1.442695, %v1012_v60  ;;  %v950_v35 = vadd.f32 %v934_v56, %v2696_v28  ;;  %v1001_v23 = vmul.f32 %v2603_v20, %v2479_v25  ;;  %v3782_v28 = vld [vmem:[#allocation79_spill] sm:$0xff]  ;;  %v3784_v56 = vld [vmem:[#allocation80_spill] sm:$0xff] }
  0x97   :  { %v1002_v44 = vmul.f32 %v2603_v20, %v2483_v30  ;;  %v951_v37 = vadd.f32 %v935_v32, %v883_v36  ;;  %v1003_v11 = vmul.f32 %v2603_v20, %v2485_v31  ;;  %v1013_v51 = vadd.f32 %v997_v9, %v945_v63  ;;  %v3819_v31 = vld [vmem:[#allocation91_spill] sm:$0xff]  ;;  %v3820_v30 = vld [vmem:[#allocation32_spill] sm:$0xff] }
  0x98   :  { %v495_v39 = vrot.slane %v494_v0, 1  ;;  %v1836_v15 = vpop.eup %1835  ;;  %v1014_v38 = vadd.f32 %v998_v2, %v946_v40  ;;  %1849 = vpow2.f32 %v1068_v5  ;;  %v1015_v46 = vadd.f32 %v999_v4, %v947_v10  ;;  %v3843_v25 = vld [vmem:[#allocation52_spill] sm:$0xff] }
  0x99   :  { %v1838_v58 = vpop.eup %1837  ;;  %v1016_v1 = vadd.f32 %v1000_v29, %v948_v61  ;;  %1851 = vpow2.f32 %v1070_v27  ;;  %v2783_v24 = vmul.f32 %v1836_v15, %v3782_v28  ;;  %v1017_v50 = vadd.f32 %v1001_v23, %v949_v43  ;;  %v3788_v61 = vld [vmem:[#allocation82_spill] sm:$0xff]  ;;  %v3790_v27 = vld [vmem:[#allocation85_spill] sm:$0xff] }
  0x9a   :  { %v496_v59 = vadd.f32 %v495_v39, %v494_v0  ;;  %v1018_v36 = vadd.f32 %v1002_v44, %v950_v35  ;;  %v2786_v41 = vmul.f32 %v1838_v58, %v3784_v56  ;;  %v1019_v60 = vadd.f32 %v1003_v11, %v951_v37  ;;  %v3792_v11 = vld [vmem:[#allocation21_spill] sm:$0xff] }
  0x9b   :  { %3783 = vst [vmem:[#allocation46_spill] sm:$0xff] %v2783_v24  ;;  %v1840_v53 = vpop.eup %1839  ;;  %v2792_v63 = vstv %s2765_s17  ;;  %v1072_v10 = vmul.f32 1.442695, %v1013_v51  ;;  %v1074_v2 = vmul.f32 1.442695, %v1014_v38  ;;  %v3794_v38 = vld [vmem:[#allocation88_spill] sm:$0xff] }
  0x9c   :  { %vm497_vm0 = vcmp.eq.f32.partialorder %v496_v59, 0.0  ;;  %3785 = vst [vmem:[#allocation47_spill] sm:$0xff] %v2786_v41  ;;  %v1842_v20 = vpop.eup %1841  ;;  %v2789_v14 = vmul.f32 %v1840_v53, %v3786_v16  ;;  %v1102_v43 = vadd.f32 %v2786_v41, %v2783_v24  ;;  %v1076_v5 = vmul.f32 1.442695, %v1015_v46  ;;  %v3815_v41 = vld [vmem:[#allocation84_spill] sm:$0xff]  ;;  %v3818_v56 = vld [vmem:[#allocation89_spill] sm:$0xff] }
  0x9d   :  { %v498_v32 = vsel %vm497_vm0, 1.0, %v496_v59  ;;  %v1844_v40 = vpop.eup %1843  ;;  %v2795_v0 = vmul.f32 %v1842_v20, %v3788_v61  ;;  %v1078_v4 = vmul.f32 1.442695, %v1016_v1  ;;  %v1080_v29 = vmul.f32 1.442695, %v1017_v50  ;;  %v3793_v59 = vld [vmem:[#allocation22_spill] sm:$0xff] }
  0x9e   :  { %3787 = vst [vmem:[#allocation58_spill] sm:$0xff] %v2789_v14  ;;  %1853 = vrcp.f32 %v498_v32  ;;  %v1846_v9 = vpop.eup %1845  ;;  %v2802_v39 = vmul.f32 %v1844_v40, %v3790_v27  ;;  %v1103_v35 = vadd.f32 %v1102_v43, %v2789_v14  ;;  %v1082_v44 = vmul.f32 1.442695, %v1018_v36  ;;  %v3796_v1 = vld [vmem:[#allocation23_spill] sm:$0xff]  ;;  %v3797_v50 = vld [vmem:[#allocation24_spill] sm:$0xff]  ;;  %v3798_v20 = vld [vmem:[#allocation25_spill] sm:$0xff] }
  0x9f   :  { %3789 = vst [vmem:[#allocation59_spill] sm:$0xff] %v2795_v0  ;;  %v1848_v23 = vpop.eup %1847  ;;  %v1084_v37 = vmul.f32 1.442695, %v1019_v60  ;;  %v2807_v15 = vmul.f32 %v2792_v63, %v3792_v11  ;;  %v2811_v51 = vmul.f32 %v2792_v63, %v3793_v59  ;;  %1855 = vpow2.f32 %v1072_v10  ;;  %v3799_v60 = vld [vmem:[#allocation26_spill] sm:$0xff]  ;;  %v3817_v61 = vld [vmem:[#allocation87_spill] sm:$0xff] }
  0xa0   :  { %3791 = vst [vmem:[#allocation63_spill] sm:$0xff] %v2802_v39  ;;  %v2814_v58 = vmul.f32 %v1846_v9, %v3794_v38  ;;  %v1104_v46 = vadd.f32 %v1103_v35, %v2795_v0  ;;  %v2819_v53 = vmul.f32 %v2792_v63, %v3796_v1  ;;  %1857 = vpow2.f32 %v1074_v2  ;;  %v3800_v43 = vld [vmem:[#allocation90_spill] sm:$0xff]  ;;  %v3802_v35 = vld [vmem:[#allocation27_spill] sm:$0xff]  ;;  %v3803_v38 = vld [vmem:[#allocation28_spill] sm:$0xff] }
  0xa1   :  { %v2823_v36 = vmul.f32 %v2792_v63, %v3797_v50  ;;  %v2827_v32 = vmul.f32 %v2792_v63, %v3798_v20  ;;  %v2831_v40 = vmul.f32 %v2792_v63, %v3799_v60  ;;  %1859 = vpow2.f32 %v1076_v5  ;;  %v3804_v50 = vld [vmem:[#allocation29_spill] sm:$0xff]  ;;  %v3805_v5 = vld [vmem:[#allocation30_spill] sm:$0xff]  ;;  %v3806_v60 = vld [vmem:[#allocation31_spill] sm:$0xff] }
  0xa2   :  { %3795 = vst [vmem:[#allocation64_spill] sm:$0xff] %v2814_v58  ;;  %v1850_v10 = vpop.eup %1849  ;;  %v2834_v9 = vmul.f32 %v1848_v23, %v3800_v43  ;;  %v1105_v2 = vadd.f32 %v1104_v46, %v2802_v39  ;;  %v2839_v11 = vmul.f32 %v2792_v63, %v3802_v35  ;;  %1861 = vpow2.f32 %v1078_v4  ;;  %v3807_v4 = vld [vmem:[#allocation33_spill] sm:$0xff]  ;;  %v3809_v39 = vld [vmem:[#allocation36_spill] sm:$0xff] }
  0xa3   :  { %v1852_v59 = vpop.eup %1851  ;;  %v2843_v1 = vmul.f32 %v2792_v63, %v3803_v38  ;;  %v2847_v20 = vmul.f32 %v2792_v63, %v3804_v50  ;;  %v2851_v23 = vmul.f32 %v2792_v63, %v3805_v5  ;;  %1863 = vpow2.f32 %v1080_v29  ;;  %v3808_v38 = vld [vmem:[#allocation34_spill] sm:$0xff] }
  0xa4   :  { %3801 = vst [vmem:[#allocation71_spill] sm:$0xff] %v2834_v9  ;;  %v1106_v46 = vadd.f32 %v1105_v2, %v2814_v58  ;;  %v2856_v43 = vmul.f32 %v2792_v63, %v3806_v60  ;;  %v2860_v35 = vmul.f32 %v2792_v63, %v3807_v4  ;;  %1865 = vpow2.f32 %v1082_v44  ;;  %v3810_v60 = vld [vmem:[#allocation92_spill] sm:$0xff]  ;;  %v3812_v4 = vld [vmem:[#allocation35_spill] sm:$0xff] }
  0xa5   :  { %v2864_v50 = vmul.f32 %v2792_v63, %v3808_v38  ;;  %v2868_v5 = vmul.f32 %v2792_v63, %v3809_v39  ;;  %v2871_v29 = vstv %s2799_s0  ;;  %1867 = vpow2.f32 %v1084_v37  ;;  %v3814_v38 = vld [vmem:[#allocation83_spill] sm:$0xff]  ;;  %v3816_v39 = vld [vmem:[#allocation86_spill] sm:$0xff] }
  0xa6   :  { %v2876_v58 = vmul.f32 %v1850_v10, %v3810_v60  ;;  %v2879_v0 = vmul.f32 %v1852_v59, %v3812_v4  ;;  %v1107_v44 = vadd.f32 %v1106_v46, %v2834_v9 }
  0xa8   :  { %v1854_v2 = vpop.eup %1853  ;;  %3811 = vst [vmem:[#allocation66_spill] sm:$0xff] %v2876_v58  ;;  %3813 = vst [vmem:[#allocation67_spill] sm:$0xff] %v2879_v0 }
  0xa9   :  { %v501_v14 = vmul.f32 %v1854_v2, %v3814_v38  ;;  %v502_v24 = vmul.f32 %v1854_v2, %v3815_v41  ;;  %v503_v27 = vmul.f32 %v1854_v2, %v3816_v39  ;;  %v504_v16 = vmul.f32 %v1854_v2, %v3817_v61  ;;  %v1856_v38 = vpop.eup %1855  ;;  %v3822_v39 = vld [vmem:[#allocation39_spill] sm:$0xff] }
  0xaa   :  { %v505_v28 = vmul.f32 %v1854_v2, %v3818_v56  ;;  %v506_v37 = vmul.f32 %v1854_v2, %v3819_v31  ;;  %v507_v10 = vmul.f32 %v1854_v2, %v3820_v30  ;;  %v508_v60 = vmul.f32 %v1854_v2, %v2617_v26  ;;  %v1858_v26 = vpop.eup %1857 }
  0xab   :  { %v1607_v59 = vpack.c.bf16 %v502_v24, %v501_v14  ;;  %606 = vst [vmem:[#allocation11] sm:$0xff] %v501_v14  ;;  %607 = vst [vmem:[#allocation11 + $0x8] sm:$0xff] %v502_v24  ;;  %v1612_v46 = vpack.c.bf16 %v504_v16, %v503_v27  ;;  %v509_v41 = vmul.f32 %v1854_v2, %v2628_v3 }
  0xac   :  { %608 = vst [vmem:[#allocation11 + $0x10] sm:$0xff] %v503_v27  ;;  %609 = vst [vmem:[#allocation11 + $0x18] sm:$0xff] %v504_v16  ;;  %v510_v4 = vmul.f32 %v1854_v2, %v2642_v42  ;;  %v1617_v61 = vpack.c.bf16 %v506_v37, %v505_v28  ;;  %v1622_v56 = vpack.c.bf16 %v508_v60, %v507_v10  ;;  %v1860_v16 = vpop.eup %1859 }
  0xad   :  { %610 = vst [vmem:[#allocation11 + $0x20] sm:$0xff] %v505_v28  ;;  %611 = vst [vmem:[#allocation11 + $0x28] sm:$0xff] %v506_v37  ;;  %v511_v30 = vmul.f32 %v1854_v2, %v2654_v57  ;;  %v512_v31 = vmul.f32 %v1854_v2, %v2673_v48  ;;  %v513_v3 = vmul.f32 %v1854_v2, %v2692_v21  ;;  %v3821_v48 = vld [vmem:[#allocation37_spill] sm:$0xff]  ;;  %v3823_v37 = vld [vmem:[#allocation38_spill] sm:$0xff] }
  0xae   :  { %612 = vst [vmem:[#allocation11 + $0x30] sm:$0xff] %v507_v10  ;;  %613 = vst [vmem:[#allocation11 + $0x38] sm:$0xff] %v508_v60  ;;  %v1627_v24 = vpack.c.bf16 %v510_v4, %v509_v41  ;;  %v514_v42 = vmul.f32 %v1854_v2, %v2703_v8  ;;  %v515_v28 = vmul.f32 %v1854_v2, %v2721_v62  ;;  %v1862_v8 = vpop.eup %1861 }
  0xaf   :  { %1608 = vst [vmem:[#allocation12] sm:$0xff] %v1607_v59   ;;  %1764 = vst [vmem:[#allocation12 + $0x8] sm:$0xff] %v1612_v46   ;;  %v1632_v14 = vpack.c.bf16 %v512_v31, %v511_v30  ;;  %v516_v57 = vmul.f32 %v1854_v2, %v2733_v54  ;;  %v2900_v27 = vmul.f32 %v2792_v63, %v3821_v48  ;;  %v2911_v54 = vstv %s2873_s18  ;;  %v1864_v2 = vpop.eup %1863  ;;  %v2913_v46 = vld [vmem:[#allocation8 + $0x80] sm:$0xff]  ;;  %v2941_v48 = vld [vmem:[#allocation8 + $0xb0] sm:$0xff] }
  0xb0   :  { %614 = vst [vmem:[#allocation11 + $0x40] sm:$0xff] %v509_v41  ;;  %615 = vst [vmem:[#allocation11 + $0x48] sm:$0xff] %v510_v4  ;;  %v2904_v21 = vmul.f32 %v2792_v63, %v3822_v39  ;;  %v1637_v62 = vpack.c.bf16 %v514_v42, %v513_v3  ;;  %v2907_v10 = vmul.f32 %v1856_v38, %v3823_v37  ;;  %v2917_v41 = vld [vmem:[#allocation8 + $0x88] sm:$0xff]  ;;  %v2921_v38 = vld [vmem:[#allocation8 + $0x90] sm:$0xff] }
  0xb1   :  { %1765 = vst [vmem:[#allocation12 + $0x10] sm:$0xff] %v1617_v61   ;;  %1766 = vst [vmem:[#allocation12 + $0x18] sm:$0xff] %v1622_v56   ;;  %v1108_v60 = vadd.f32 %v1107_v44, %v2876_v58  ;;  %v1642_v59 = vpack.c.bf16 %v516_v57, %v515_v28  ;;  %v260_v63 = vmul.f32 %v2913_v46, %v2871_v29  ;;  %v1866_v61 = vpop.eup %1865  ;;  %v3828_v56 = vld [vmem:[#allocation40_spill] sm:$0xff]  ;;  %v3842_v58 = vld [vmem:[#allocation42_spill] sm:$0xff] }
  0xb2   :  { %616 = vst [vmem:[#allocation11 + $0x50] sm:$0xff] %v511_v30  ;;  %617 = vst [vmem:[#allocation11 + $0x58] sm:$0xff] %v512_v31  ;;  %v261_v4 = vmul.f32 %v2917_v41, %v2871_v29  ;;  %v262_v44 = vmul.f32 %v2921_v38, %v2871_v29  ;;  %v2926_v30 = vmul.f32 %v1858_v26, %v3828_v56 }
  0xb3   :  { %1767 = vst [vmem:[#allocation12 + $0x20] sm:$0xff] %v1627_v24   ;;  %618 = vst [vmem:[#allocation11 + $0x60] sm:$0xff] %v513_v3  ;;  %v1109_v31 = vadd.f32 %v1108_v60, %v2879_v0  ;;  %v2929_v24 = vld [vmem:[#allocation8 + $0x98] sm:$0xff]  ;;  %v266_v39 = vmul.f32 %v2941_v48, %v2871_v29  ;;  %v3834_v60 = vld [vmem:[#allocation45_spill] sm:$0xff]  ;;  %v2974_v9 = vmul.f32 %v1862_v8, %v3842_v58 }
  0xb4   :  { %619 = vst [vmem:[#allocation11 + $0x68] sm:$0xff] %v514_v42  ;;  %620 = vst [vmem:[#allocation11 + $0x70] sm:$0xff] %v515_v28  ;;  %v263_v3 = vmul.f32 %v2929_v24, %v2871_v29  ;;  %v2933_v42 = vld [vmem:[#allocation8 + $0xa0] sm:$0xff]  ;;  %v268_v56 = vmul.f32 %v2871_v29, %v3834_v60  ;;  %v276_v55 = vadd.f32 %v260_v63, %v2807_v15  ;;  %v3848_v63 = vld [vmem:[#allocation44_spill] sm:$0xff] }
  0xb5   :  { %3824 = vst [vmem:[#allocation69_spill] sm:$0xff] %v2907_v10  ;;  %1768 = vst [vmem:[#allocation12 + $0x28] sm:$0xff] %v1632_v14   ;;  %v264_v28 = vmul.f32 %v2933_v42, %v2871_v29  ;;  %v1868_v14 = vpop.eup %1867  ;;  %v3845_v8 = vld [vmem:[#allocation53_spill] sm:$0xff] }
  0xb6   :  { %621 = vst [vmem:[#allocation11 + $0x78] sm:$0xff] %v516_v57  ;;  %3825 = vst [vmem:[#allocation70_spill] sm:$0xff] %v2913_v46  ;;  %v2937_v57 = vld [vmem:[#allocation8 + $0xa8] sm:$0xff]  ;;  %v3839_v46 = vld [vmem:[#allocation49_spill] sm:$0xff]  ;;  %v279_v47 = vadd.f32 %v263_v3, %v2823_v36  ;;  %v3005_v3 = vmul.f32 %v1868_v14, %v2714_v45 }
  0xb7   :  { %3826 = vst [vmem:[#allocation72_spill] sm:$0xff] %v2917_v41  ;;  %3827 = vst [vmem:[#allocation21_spill] sm:$0xff] %v2921_v38  ;;  %v265_v26 = vmul.f32 %v2937_v57, %v2871_v29  ;;  %v2961_v38 = vld [vmem:[#allocation8 + $0xd0] sm:$0xff]  ;;  %v3838_v41 = vld [vmem:[#allocation48_spill] sm:$0xff]  ;;  %v272_v0 = vmul.f32 %v2871_v29, %v3839_v46  ;;  %v278_v46 = vadd.f32 %v262_v44, %v2819_v53 }
  0xb8   :  { %1769 = vst [vmem:[#allocation12 + $0x30] sm:$0xff] %v1637_v62   ;;  %3829 = vst [vmem:[#allocation22_spill] sm:$0xff] %v2929_v24  ;;  %v2945_v62 = vld [vmem:[#allocation8 + $0xb8] sm:$0xff]  ;;  %v2957_v24 = vld [vmem:[#allocation8 + $0xc8] sm:$0xff]  ;;  %v271_v60 = vmul.f32 %v2871_v29, %v3838_v41  ;;  %v277_v41 = vadd.f32 %v261_v4, %v2811_v51  ;;  %v282_v53 = vadd.f32 %v266_v39, %v2839_v11 }
  0xb9   :  { %3830 = vst [vmem:[#allocation88_spill] sm:$0xff] %v2933_v42  ;;  %1770 = vst [vmem:[#allocation12 + $0x38] sm:$0xff] %v1642_v59   ;;  %v267_v37 = vmul.f32 %v2945_v62, %v2871_v29  ;;  %v3835_v59 = vld [vmem:[#allocation41_spill] sm:$0xff]  ;;  %v281_v51 = vadd.f32 %v265_v26, %v2831_v40  ;;  %v284_v4 = vadd.f32 %v268_v56, %v2847_v20  ;;  %v3849_v44 = vld [vmem:[#allocation56_spill] sm:$0xff] }
  0xba   :  { %3831 = vst [vmem:[#allocation23_spill] sm:$0xff] %v2937_v57  ;;  %3832 = vst [vmem:[#allocation24_spill] sm:$0xff] %v2941_v48  ;;  %v2954_v42 = vmul.f32 %v1860_v16, %v3835_v59  ;;  %v1110_v57 = vadd.f32 %v1109_v31, %v2907_v10  ;;  %v269_v48 = vmul.f32 %v2957_v24, %v2871_v29  ;;  %v3840_v16 = vld [vmem:[#allocation50_spill] sm:$0xff]  ;;  %v3841_v31 = vld [vmem:[#allocation51_spill] sm:$0xff] }
  0xbb   :  { %3833 = vst [vmem:[#allocation25_spill] sm:$0xff] %v2945_v62  ;;  %3836 = vst [vmem:[#allocation26_spill] sm:$0xff] %v2957_v24  ;;  %v270_v62 = vmul.f32 %v2961_v38, %v2871_v29  ;;  %v273_v59 = vmul.f32 %v2871_v29, %v3840_v16  ;;  %v274_v10 = vmul.f32 %v2871_v29, %v3841_v31  ;;  %v3851_v56 = vld [vmem:[#allocation60_spill] sm:$0xff]  ;;  %v3852_v14 = vld [vmem:[#allocation61_spill] sm:$0xff] }
  0xbc   :  { %3837 = vst [vmem:[#allocation90_spill] sm:$0xff] %v2961_v38  ;;  %v1111_v24 = vadd.f32 %v1110_v57, %v2926_v30  ;;  %v275_v38 = vmul.f32 %v2871_v29, %v3843_v25  ;;  %v280_v16 = vadd.f32 %v264_v28, %v2827_v32  ;;  %v2985_v31 = vmul.f32 %v1864_v2, %v3844_v49  ;;  %v3846_v25 = vld [vmem:[#allocation54_spill] sm:$0xff]  ;;  %v3847_v29 = vld [vmem:[#allocation55_spill] sm:$0xff]  ;;  %v3850_v28 = vld [vmem:[#allocation57_spill] sm:$0xff] }
  0xbd   :  { %v328_v57 = vmul.f32 %v2911_v54, %v3845_v8  ;;  %v329_v15 = vmul.f32 %v2911_v54, %v3846_v25  ;;  %v283_v36 = vadd.f32 %v267_v37, %v2843_v1  ;;  %v330_v32 = vmul.f32 %v2911_v54, %v3847_v29  ;;  %v3854_v29 = vld [vmem:[#allocation65_spill] sm:$0xff] }
  0xbe   :  { %v1112_v58 = vadd.f32 %v1111_v24, %v2954_v42  ;;  %v2998_v49 = vmul.f32 %v1866_v61, %v3848_v63  ;;  %v331_v24 = vmul.f32 %v2911_v54, %v3849_v44  ;;  %v285_v40 = vadd.f32 %v269_v48, %v2851_v23  ;;  %v3853_v23 = vld [vmem:[#allocation62_spill] sm:$0xff] }
  0xbf   :  { %v3009_v11 = vadd.f32 %v270_v62, %v2856_v43  ;;  %v3012_v1 = vstv %s2951_s19  ;;  %v332_v26 = vmul.f32 %v2911_v54, %v3850_v28  ;;  %v344_v39 = vadd.f32 %v328_v57, %v276_v55 }
  0xc0   :  { %v1113_v2 = vadd.f32 %v1112_v58, %v2974_v9  ;;  %v345_v20 = vadd.f32 %v329_v15, %v277_v41  ;;  %v346_v37 = vadd.f32 %v330_v32, %v278_v46  ;;  %v396_v58 = vmul.f32 %v3012_v1, %v3851_v56  ;;  %v3036_v32 = vld [vmem:[#allocation8 + $0x128] sm:$0xff] }
  0xc1   :  { %v397_v8 = vmul.f32 %v3012_v1, %v3852_v14  ;;  %v398_v43 = vmul.f32 %v3012_v1, %v3853_v23  ;;  %v287_v62 = vadd.f32 %v271_v60, %v2860_v35  ;;  %v347_v25 = vadd.f32 %v331_v24, %v279_v47  ;;  %v3040_v35 = vld [vmem:[#allocation8 + $0x130] sm:$0xff]  ;;  %v3050_v24 = vld [vmem:[#allocation8 + $0x140] sm:$0xff] }
  0xc2   :  { %v1114_v61 = vadd.f32 %v1113_v2, %v2985_v31  ;;  %v399_v2 = vmul.f32 %v3012_v1, %v3854_v29  ;;  %v288_v55 = vadd.f32 %v272_v0, %v2864_v50  ;;  %v289_v41 = vadd.f32 %v273_v59, %v2868_v5  ;;  %v3855_v5 = vld [vmem:[#allocation68_spill] sm:$0xff] }
  0xc3   :  { %v3030_v46 = vadd.f32 %v274_v10, %v2900_v27  ;;  %v3033_v57 = vadd.f32 %v275_v38, %v2904_v21  ;;  %v333_v47 = vmul.f32 %v3036_v32, %v2911_v54  ;;  %v334_v0 = vmul.f32 %v3040_v35, %v2911_v54  ;;  %v3046_v59 = vld [vmem:[#allocation8 + $0x138] sm:$0xff] }
  0xc4   :  { %v1115_v48 = vadd.f32 %v1114_v61, %v2998_v49  ;;  %v348_v50 = vadd.f32 %v332_v26, %v280_v16  ;;  %v400_v27 = vmul.f32 %v3012_v1, %v3855_v5  ;;  %v412_v10 = vadd.f32 %v396_v58, %v344_v39 }
  0xc5   :  { %v413_v60 = vadd.f32 %v397_v8, %v345_v20  ;;  %v414_v21 = vadd.f32 %v398_v43, %v346_v37  ;;  %v335_v44 = vmul.f32 %v3046_v59, %v2911_v54  ;;  %v336_v61 = vmul.f32 %v3050_v24, %v2911_v54 }
  0xc6   :  { %v1116_v15 = vadd.f32 %v1115_v48, %v3005_v3  ;;  %v415_v28 = vadd.f32 %v399_v2, %v347_v25  ;;  %v337_v16 = vmul.f32 %v2911_v54, %v3777_v6  ;;  %v338_v26 = vmul.f32 %v2911_v54, %v3778_v12 }
  0xc7   :  { %v339_v39 = vmul.f32 %v2911_v54, %v3779_v22  ;;  %v340_v20 = vmul.f32 %v2911_v54, %v3780_v52  ;;  %v341_v56 = vmul.f32 %v2911_v54, %v3781_v7  ;;  %v342_v58 = vmul.f32 %v2911_v54, %v2434_v17  ;;  %v3068_v22 = vld [vmem:[#allocation8 + $0x1a8] sm:$0xff] }
  0xc8   :  { %v1117_v38 = vrot.slane %v1116_v15, 4  ;;  %v343_v14 = vmul.f32 %v2911_v54, %v2444_v19  ;;  %v416_v6 = vadd.f32 %v400_v27, %v348_v50  ;;  %v517_v8 = vmul.f32 1.442695, %v412_v10  ;;  %v3857_v10 = vld [vmem:[#allocation74_spill] sm:$0xff] }
  0xc9   :  { %v519_v23 = vmul.f32 1.442695, %v413_v60  ;;  %v521_v12 = vmul.f32 1.442695, %v414_v21  ;;  %v349_v48 = vadd.f32 %v333_v47, %v281_v51  ;;  %v401_v52 = vmul.f32 %v3068_v22, %v3012_v1 }
  0xca   :  { %v1118_v37 = vadd.f32 %v1117_v38, %v1116_v15  ;;  %v523_v25 = vmul.f32 1.442695, %v415_v28  ;;  %v350_v29 = vadd.f32 %v334_v0, %v282_v53  ;;  %v351_v7 = vadd.f32 %v335_v44, %v283_v36  ;;  %v3858_v38 = vld [vmem:[#allocation75_spill] sm:$0xff] }
  0xcb   :  { %v402_v17 = vmul.f32 %v3012_v1, %v2436_v13  ;;  %1869 = vpow2.f32 %v517_v8  ;;  %v352_v19 = vadd.f32 %v336_v61, %v284_v4  ;;  %v403_v54 = vmul.f32 %v3012_v1, %v2452_v34  ;;  %v3856_v4 = vld [vmem:[#allocation73_spill] sm:$0xff]  ;;  %v3859_v61 = vld [vmem:[#allocation76_spill] sm:$0xff] }
  0xcc   :  { %v1119_v43 = vrot.slane %v1118_v37, 2  ;;  %1871 = vpow2.f32 %v519_v23  ;;  %v353_v15 = vadd.f32 %v337_v16, %v285_v40  ;;  %v404_v51 = vmul.f32 %v3012_v1, %v2460_v18  ;;  %v3861_v23 = vld [vmem:[#allocation78_spill] sm:$0xff] }
  0xcd   :  { %1873 = vpow2.f32 %v521_v12  ;;  %v525_v47 = vmul.f32 1.442695, %v416_v6  ;;  %v405_v53 = vmul.f32 %v3012_v1, %v2464_v33  ;;  %v417_v36 = vadd.f32 %v401_v52, %v349_v48 }
  0xce   :  { %v1120_v2 = vadd.f32 %v1119_v43, %v1118_v37  ;;  %1875 = vpow2.f32 %v523_v25  ;;  %v354_v13 = vadd.f32 %v338_v26, %v3009_v11  ;;  %v355_v0 = vadd.f32 %v339_v39, %v287_v62 }
  0xcf   :  { %v406_v5 = vmul.f32 %v3012_v1, %v3856_v4  ;;  %v418_v34 = vadd.f32 %v402_v17, %v350_v29  ;;  %v356_v40 = vadd.f32 %v340_v20, %v288_v55  ;;  %v407_v18 = vmul.f32 %v3012_v1, %v3857_v10 }
  0xd0   :  { %v1121_v50 = vrot.slane %v1120_v2, 1  ;;  %v419_v60 = vadd.f32 %v403_v54, %v351_v7  ;;  %v357_v21 = vadd.f32 %v341_v56, %v289_v41  ;;  %v408_v44 = vmul.f32 %v3012_v1, %v3858_v38  ;;  %v3860_v41 = vld [vmem:[#allocation77_spill] sm:$0xff] }
  0xd1   :  { %v420_v33 = vadd.f32 %v404_v51, %v352_v19  ;;  %1877 = vpow2.f32 %v525_v47  ;;  %v409_v11 = vmul.f32 %v3012_v1, %v3859_v61  ;;  %v421_v62 = vadd.f32 %v405_v53, %v353_v15  ;;  %v3864_v54 = vld [vmem:[#allocation81_spill] sm:$0xff]  ;;  %v3868_v61 = vld [vmem:[#allocation46_spill] sm:$0xff] }
  0xd2   :  { %v1122_v27 = vadd.f32 %v1121_v50, %v1120_v2  ;;  %v527_v28 = vmul.f32 1.442695, %v417_v36  ;;  %v358_v55 = vadd.f32 %v342_v58, %v3030_v46  ;;  %v422_v26 = vadd.f32 %v406_v5, %v354_v13  ;;  %v3862_v58 = vld [vmem:[#allocation79_spill] sm:$0xff]  ;;  %v3863_v2 = vld [vmem:[#allocation80_spill] sm:$0xff]  ;;  %v3865_v36 = vld [vmem:[#allocation82_spill] sm:$0xff] }
  0xd3   :  { %v529_v39 = vmul.f32 1.442695, %v418_v34  ;;  %v410_v20 = vmul.f32 %v3012_v1, %v3860_v41  ;;  %v423_v37 = vadd.f32 %v407_v18, %v355_v0  ;;  %v531_v56 = vmul.f32 1.442695, %v419_v60  ;;  %v3866_v60 = vld [vmem:[#allocation85_spill] sm:$0xff] }
  0xd4   :  { %vm1123_vm1 = vcmp.eq.f32.partialorder %v1122_v27, 0.0  ;;  %v359_v8 = vadd.f32 %v343_v14, %v3033_v57  ;;  %v411_v12 = vmul.f32 %v3012_v1, %v3861_v23  ;;  %v424_v43 = vadd.f32 %v408_v44, %v356_v40  ;;  %v1954_v40 = vld [vmem:[#allocation8] sm:$0xff]  ;;  %v1955_v44 = vld [vmem:[#allocation8 + $0x8] sm:$0xff] }
  0xd5   :  { %v1124_v16 = vsel %vm1123_vm1, 1.0, %v1122_v27  ;;  %v1870_v6 = vpop.eup %1869  ;;  %v533_v48 = vmul.f32 1.442695, %v420_v33  ;;  %v425_v25 = vadd.f32 %v409_v11, %v357_v21  ;;  %v535_v46 = vmul.f32 1.442695, %v421_v62  ;;  %v3869_v62 = vld [vmem:[#allocation47_spill] sm:$0xff] }
  0xd6   :  { %1879 = vrcp.f32 %v1124_v16  ;;  %v1872_v52 = vpop.eup %1871  ;;  %v3098_v29 = vmul.f32 %v1870_v6, %v3862_v58  ;;  %v537_v17 = vmul.f32 1.442695, %v422_v26  ;;  %v426_v14 = vadd.f32 %v410_v20, %v358_v55  ;;  %v3870_v16 = vld [vmem:[#allocation58_spill] sm:$0xff]  ;;  %v3871_v26 = vld [vmem:[#allocation59_spill] sm:$0xff] }
  0xd7   :  { %1881 = vpow2.f32 %v527_v28  ;;  %v1874_v7 = vpop.eup %1873  ;;  %v3101_v19 = vmul.f32 %v1872_v52, %v3863_v2  ;;  %v539_v1 = vmul.f32 1.442695, %v423_v37  ;;  %v427_v51 = vadd.f32 %v411_v12, %v359_v8  ;;  %v3872_v20 = vld [vmem:[#allocation63_spill] sm:$0xff]  ;;  %v3875_v12 = vld [vmem:[#allocation66_spill] sm:$0xff] }
  0xd8   :  { %1883 = vpow2.f32 %v529_v39  ;;  %v1876_v57 = vpop.eup %1875  ;;  %v3104_v15 = vmul.f32 %v1874_v7, %v3864_v54  ;;  %v541_v47 = vmul.f32 1.442695, %v424_v43  ;;  %v543_v53 = vmul.f32 1.442695, %v425_v25  ;;  %v3874_v8 = vld [vmem:[#allocation71_spill] sm:$0xff]  ;;  %v3877_v7 = vld [vmem:[#allocation69_spill] sm:$0xff] }
  0xd9   :  { %1885 = vpow2.f32 %v531_v56  ;;  %v565_v50 = vadd.f32 %v3101_v19, %v3098_v29  ;;  %v3109_v13 = vmul.f32 %v1876_v57, %v3865_v36  ;;  %v3112_v0 = vstv %s3089_s22  ;;  %v3873_v56 = vld [vmem:[#allocation64_spill] sm:$0xff] }
  0xda   :  { %1887 = vpow2.f32 %v533_v48  ;;  %v545_v34 = vmul.f32 1.442695, %v426_v14  ;;  %v3115_v27 = vmul.f32 1.442695, %v427_v51  ;;  %v3118_v10 = vmul.f32 %v1954_v40, %v3112_v0  ;;  %v1957_v40 = vld [vmem:[#allocation8 + $0x10] sm:$0xff] }
  0xdb   :  { %1889 = vpow2.f32 %v535_v46  ;;  %v1878_v4 = vpop.eup %1877  ;;  %v566_v5 = vadd.f32 %v565_v50, %v3104_v15  ;;  %v3127_v33 = vmul.f32 %v1955_v44, %v3112_v0  ;;  %v3876_v46 = vld [vmem:[#allocation67_spill] sm:$0xff] }
  0xdc   :  { %1891 = vpow2.f32 %v537_v17  ;;  %v3121_v21 = vmul.f32 %v1878_v4, %v3866_v60 }
  0xdd   :  { %1893 = vpow2.f32 %v539_v1  ;;  %v3124_v38 = vadd.f32 %v566_v5, %v3109_v13  ;;  %v3159_v5 = vld [vmem:[#allocation9 + $0x28] sm:$0xff] }
  0xde   :  { %1895 = vpow2.f32 %v541_v47  ;;  %3867 = vst [vmem:[#allocation27_spill] sm:$0xff] %v3121_v21 }
  0xdf   :  { %1897 = vpow2.f32 %v543_v53 }
  0xe0   :  { %v1880_v18 = vpop.eup %1879  ;;  %1899 = vpow2.f32 %v545_v34  ;;  %v1958_v34 = vld [vmem:[#allocation8 + $0x18] sm:$0xff] }
  0xe1   :  { %v1127_v11 = vmul.f32 %v1880_v18, %v3868_v61  ;;  %v1128_v28 = vmul.f32 %v1880_v18, %v3869_v62  ;;  %v1129_v55 = vmul.f32 %v1880_v18, %v3870_v16  ;;  %v1130_v39 = vmul.f32 %v1880_v18, %v3871_v26  ;;  %v1882_v41 = vpop.eup %1881  ;;  %v3181_v61 = vld [vmem:[#allocation9 + $0x30] sm:$0xff]  ;;  %v1960_v62 = vld [vmem:[#allocation8 + $0x20] sm:$0xff] }
  0xe2   :  { %v1131_v37 = vmul.f32 %v1880_v18, %v3872_v20  ;;  %v1132_v6 = vmul.f32 %v1880_v18, %v3873_v56  ;;  %v1133_v23 = vmul.f32 %v1880_v18, %v3874_v8  ;;  %v1134_v43 = vmul.f32 %v1880_v18, %v3875_v12  ;;  %v1884_v48 = vpop.eup %1883  ;;  %v1963_v20 = vld [vmem:[#allocation8 + $0x38] sm:$0xff] }
  0xe3   :  { %v1687_v52 = vpack.c.bf16 %v1128_v28, %v1127_v11  ;;  %1233 = vst [vmem:[#allocation11 + $0x80] sm:$0xff] %v1127_v11  ;;  %1234 = vst [vmem:[#allocation11 + $0x88] sm:$0xff] %v1128_v28  ;;  %v1692_v25 = vpack.c.bf16 %v1130_v39, %v1129_v55  ;;  %v1135_v58 = vmul.f32 %v1880_v18, %v3876_v46  ;;  %v3143_v2 = vpop.eup %1885  ;;  %1901 = vpow2.f32 %v3115_v27 }
  0xe4   :  { %1235 = vst [vmem:[#allocation11 + $0x90] sm:$0xff] %v1129_v55  ;;  %1236 = vst [vmem:[#allocation11 + $0x98] sm:$0xff] %v1130_v39  ;;  %v1136_v17 = vmul.f32 %v1880_v18, %v3877_v7  ;;  %v1697_v57 = vpack.c.bf16 %v1132_v6, %v1131_v37  ;;  %v1702_v14 = vpack.c.bf16 %v1134_v43, %v1133_v23  ;;  %v3149_v51 = vpop.eup %1887  ;;  %v1961_v55 = vld [vmem:[#allocation8 + $0x28] sm:$0xff]  ;;  %v1962_v39 = vld [vmem:[#allocation8 + $0x30] sm:$0xff] }
  0xe5   :  { %1237 = vst [vmem:[#allocation11 + $0xa0] sm:$0xff] %v1131_v37  ;;  %1238 = vst [vmem:[#allocation11 + $0xa8] sm:$0xff] %v1132_v6  ;;  %v1137_v1 = vmul.f32 %v1880_v18, %v2926_v30  ;;  %v1138_v54 = vmul.f32 %v1880_v18, %v2954_v42  ;;  %v1139_v50 = vmul.f32 %v1880_v18, %v2974_v9  ;;  %v3156_v30 = vpop.eup %1889 }
  0xe6   :  { %1239 = vst [vmem:[#allocation11 + $0xb0] sm:$0xff] %v1133_v23  ;;  %1240 = vst [vmem:[#allocation11 + $0xb8] sm:$0xff] %v1134_v43  ;;  %v1707_v47 = vpack.c.bf16 %v1136_v17, %v1135_v58  ;;  %v1140_v53 = vmul.f32 %v1880_v18, %v2985_v31  ;;  %v1141_v36 = vmul.f32 %v1880_v18, %v2998_v49  ;;  %v3167_v31 = vpop.eup %1891 }
  0xe7   :  { %1688 = vst [vmem:[#allocation12 + $0x40] sm:$0xff] %v1687_v52   ;;  %1778 = vst [vmem:[#allocation12 + $0x48] sm:$0xff] %v1692_v25   ;;  %v1712_v42 = vpack.c.bf16 %v1138_v54, %v1137_v1  ;;  %v1142_v4 = vmul.f32 %v1880_v18, %v3005_v3  ;;  %v3162_v9 = vmul.f32 %v3159_v5, %v1882_v41  ;;  %v3179_v60 = vpop.eup %1893 }
  0xe8   :  { %1241 = vst [vmem:[#allocation11 + $0xc0] sm:$0xff] %v1135_v58  ;;  %1242 = vst [vmem:[#allocation11 + $0xc8] sm:$0xff] %v1136_v17  ;;  %v1717_v49 = vpack.c.bf16 %v1140_v53, %v1139_v50  ;;  %v3171_v3 = vmul.f32 %v1957_v40, %v3112_v0  ;;  %v3174_v18 = vmul.f32 %v1958_v34, %v3112_v0  ;;  %v3191_v16 = vpop.eup %1895 }
  0xe9   :  { %1779 = vst [vmem:[#allocation12 + $0x50] sm:$0xff] %v1697_v57   ;;  %1780 = vst [vmem:[#allocation12 + $0x58] sm:$0xff] %v1702_v14   ;;  %v1722_v44 = vpack.c.bf16 %v1142_v4, %v1141_v36  ;;  %v3184_v27 = vmul.f32 %v3181_v61, %v1884_v48  ;;  %v568_v11 = vadd.f32 %v3124_v38, %v3121_v21  ;;  %v1964_v38 = vld [vmem:[#allocation8 + $0x40] sm:$0xff] }
  0xea   :  { %1243 = vst [vmem:[#allocation11 + $0xd0] sm:$0xff] %v1137_v1  ;;  %1244 = vst [vmem:[#allocation11 + $0xd8] sm:$0xff] %v1138_v54  ;;  %v3189_v28 = vmul.f32 %v1960_v62, %v3112_v0  ;;  %v3194_v26 = vmul.f32 %v1961_v55, %v3112_v0  ;;  %v3197_v41 = vmul.f32 %v1962_v39, %v3112_v0 }
  0xeb   :  { %3878 = vst [vmem:[#allocation28_spill] sm:$0xff] %v3162_v9  ;;  %1781 = vst [vmem:[#allocation12 + $0x60] sm:$0xff] %v1707_v47   ;;  %v3200_v37 = vmul.f32 %v1963_v20, %v3112_v0  ;;  %v3203_v56 = vmul.f32 %v1964_v38, %v3112_v0 }
  0xec   :  { %1245 = vst [vmem:[#allocation11 + $0xe0] sm:$0xff] %v1139_v50  ;;  %1246 = vst [vmem:[#allocation11 + $0xe8] sm:$0xff] %v1140_v53 }
  0xed   :  { %1247 = vst [vmem:[#allocation11 + $0xf0] sm:$0xff] %v1141_v36  ;;  %1782 = vst [vmem:[#allocation12 + $0x68] sm:$0xff] %v1712_v42  }
  0xee   :  { %1248 = vst [vmem:[#allocation11 + $0xf8] sm:$0xff] %v1142_v4  ;;  %3879 = vst [vmem:[#allocation29_spill] sm:$0xff] %v3184_v27 }
  0xef   :  { %1783 = vst [vmem:[#allocation12 + $0x70] sm:$0xff] %v1717_v49  }
  0xf0   :  { %2096 = shalt.err (!%p2093_p0)
}
  0xf1   :  { %s2097_s8 = scalar_lea.hbm %s3520_s4, 4096 }
  0xf2   :  { %p2098_p1 = scmp.ne.s32.totalorder %s3520_s4, %s2097_s8  ;;  %p2101_p2 = scmp.lt.u32.totalorder %s2097_s8, %s3520_s4 }
  0xf4   :  { %p2103_p3 = pnand %p2101_p2, %p2098_p1 }
  0xf6   :  { %2106 = shalt.err (!%p2103_p3)
}
  0xf7   :  { %1422 = dma.vmem_to_hbm [thread:$0]  %s3165_s25, 4096, %s3520_s4, [#allocation4], %s2166_s20, %s2166_s20, %s2167_s21   ;;  %v3225_v6 = vpop.eup %1897  ;;  %1784 = vst [vmem:[#allocation12 + $0x78] sm:$0xff] %v1722_v44   ;;  %v3227_v8 = vld [vmem:[#allocation9 + $0x38] sm:$0xff]  ;;  %v569_v12 = vadd.f32 %v568_v11, %v3162_v9  ;;  %v1966_v43 = vld [vmem:[#allocation8 + $0x48] sm:$0xff]  ;;  %v1967_v25 = vld [vmem:[#allocation8 + $0x50] sm:$0xff] }
  0xf8   :  { %v3231_v23 = vmul.f32 %v3227_v8, %v3143_v2  ;;  %v3235_v48 = vmul.f32 %v1966_v43, %v3112_v0  ;;  %v3238_v52 = vstv %s3137_s23  ;;  %v3241_v46 = vmul.f32 %v1967_v25, %v3112_v0  ;;  %v1968_v58 = vld [vmem:[#allocation8 + $0x58] sm:$0xff]  ;;  %v1969_v17 = vld [vmem:[#allocation8 + $0x60] sm:$0xff]  ;;  %v1970_v57 = vld [vmem:[#allocation8 + $0x68] sm:$0xff]  ;;  %s2107_s4 = scalar_lea.vmem %s3177_s27, 2048  ;;  %p2112_p5 = scmp.lt.s32.totalorder %s3177_s27, %s3177_s27 }
  0xf9   :  { %v3244_v7 = vmul.f32 %v1968_v58, %v3112_v0  ;;  %v3247_v2 = vmul.f32 %v1969_v17, %v3112_v0  ;;  %v3250_v14 = vmul.f32 %v1970_v57, %v3112_v0  ;;  %p2108_p4 = scmp.ne.s32.totalorder %s3177_s27, %s2107_s4  ;;  %p2113_p6 = scmp.lt.s32.totalorder %s2107_s4, %s2107_s4 }
  0xfa   :  { %3880 = vst [vmem:[#allocation30_spill] sm:$0xff] %v3231_v23 }
  0xfb   :  { %p2114_p7 = por %p2113_p6, %p2112_p5 }
  0xfd   :  { %p2115_p8 = pnand %p2114_p7, %p2108_p4 }
  0xff   :  { %2118 = shalt.err (!%p2115_p8)
}
 0x100   :  { %s2119_s3 = scalar_lea.hbm %s3521_s5, 2048 }
 0x101   :  { %p2120_p9 = scmp.ne.s32.totalorder %s3521_s5, %s2119_s3  ;;  %p2123_p10 = scmp.lt.u32.totalorder %s2119_s3, %s3521_s5 }
 0x103   :  { %p2125_p11 = pnand %p2123_p10, %p2120_p9 }
 0x105   :  { %2128 = shalt.err (!%p2125_p11)
}
 0x106   :  { %s2171_s17 = smov 64   ;;  %s2172_s0 = smov 4   ;;  %v3272_v1 = vld [vmem:[#allocation9 + $0x40] sm:$0xff]  ;;  %v570_v47 = vadd.f32 %v569_v12, %v3184_v27  ;;  %v1972_v50 = vld [vmem:[#allocation8 + $0x70] sm:$0xff]  ;;  %v1973_v36 = vld [vmem:[#allocation8 + $0x78] sm:$0xff]  ;;  %v3292_v11 = vstv %s3154_s28 }
 0x107   :  { %1434 = dma.vmem_to_hbm [thread:$0]  %s3177_s27, 2048, %s3521_s5, [#allocation13], %s2171_s17, %s2171_s17, %s2172_s0   ;;  %3881 = vst [vmem:[#allocation31_spill] sm:$0xff] %v3272_v1  ;;  %v3276_v54 = vmul.f32 %v3272_v1, %v3149_v51  ;;  %v3280_v53 = vmul.f32 %v1972_v50, %v3112_v0  ;;  %v3283_v42 = vmul.f32 %v1973_v36, %v3112_v0  ;;  %v3883_v4 = vld [vmem:[#allocation70_spill] sm:$0xff]  ;;  %v3884_v40 = vld [vmem:[#allocation72_spill] sm:$0xff]  ;;  %v3885_v44 = vld [vmem:[#allocation21_spill] sm:$0xff]  ;;  %v1900_v36 = vpop.eup %1899 }
 0x108   :  { %v886_v49 = vmul.f32 %v3883_v4, %v3238_v52  ;;  %v887_v34 = vmul.f32 %v3884_v40, %v3238_v52  ;;  %v888_v51 = vmul.f32 %v3885_v44, %v3238_v52  ;;  %v3294_v62 = vld [vmem:[#allocation9 + $0x48] sm:$0xff]  ;;  %v571_v0 = vadd.f32 %v570_v47, %v3231_v23  ;;  %v3889_v38 = vld [vmem:[#allocation88_spill] sm:$0xff]  ;;  %s3305_s5 = sld [smem:[#allocation7 + $0x83]]  ;;  %v3890_v43 = vld [vmem:[#allocation23_spill] sm:$0xff]  ;;  %s2173_s22 = smov [#allocation14]  }
 0x109   :  { %3882 = vst [vmem:[#allocation33_spill] sm:$0xff] %v3276_v54  ;;  %3886 = vst [vmem:[#allocation34_spill] sm:$0xff] %v3294_v62  ;;  %v3298_v55 = vmul.f32 %v3294_v62, %v3156_v30  ;;  %v3888_v39 = vld [vmem:[#allocation22_spill] sm:$0xff]  ;;  %v890_v12 = vmul.f32 %v3889_v38, %v3238_v52  ;;  %v891_v25 = vmul.f32 %v3890_v43, %v3238_v52  ;;  %v3891_v58 = vld [vmem:[#allocation24_spill] sm:$0xff]  ;;  %s1440_s23 = sshll.u32 %s2173_s22, 4  ;;  %s1441_s23 = int_to_ptr.vmem [resolvable:$true] %s1440_s23 }
 0x10a   :  { %v889_v20 = vmul.f32 %v3888_v39, %v3238_v52  ;;  %v892_v17 = vmul.f32 %v3891_v58, %v3238_v52  ;;  %v3892_v57 = vld [vmem:[#allocation25_spill] sm:$0xff]  ;;  %v3318_v4 = vld [vmem:[#allocation9 + $0x50] sm:$0xff]  ;;  %v572_v44 = vadd.f32 %v571_v0, %v3276_v54  ;;  %v3895_v39 = vld [vmem:[#allocation26_spill] sm:$0xff]  ;;  %v902_v9 = vadd.f32 %v886_v49, %v3118_v10  ;;  %s2129_s24 = scalar_lea.vmem %s1441_s23, 2048  ;;  %p2134_p13 = scmp.lt.s32.totalorder %s1441_s23, %s1441_s23 }
 0x10b   :  { %3887 = vst [vmem:[#allocation36_spill] sm:$0xff] %v3298_v55  ;;  %v3313_v30 = vmul.f32 %v3892_v57, %v3238_v52  ;;  %v1975_v50 = vld [vmem:[#allocation8 + $0xc0] sm:$0xff]  ;;  %3893 = vst [vmem:[#allocation92_spill] sm:$0xff] %v3318_v4  ;;  %v3322_v40 = vmul.f32 %v3318_v4, %v3167_v31  ;;  %v3327_v38 = vmul.f32 %v3895_v39, %v3238_v52  ;;  %v3896_v43 = vld [vmem:[#allocation90_spill] sm:$0xff]  ;;  %v1902_v57 = vpop.eup %1901  ;;  %p2130_p12 = scmp.ne.s32.totalorder %s1441_s23, %s2129_s24  ;;  %p2135_p0 = scmp.lt.s32.totalorder %s2129_s24, %s2129_s24 }
 0x10c   :  { %v3316_v47 = vmul.f32 %v1975_v50, %v3238_v52  ;;  %v3331_v58 = vmul.f32 %v3896_v43, %v3238_v52  ;;  %v1977_v50 = vld [vmem:[#allocation8 + $0xd8] sm:$0xff]  ;;  %v1978_v1 = vld [vmem:[#allocation8 + $0xe0] sm:$0xff]  ;;  %v1979_v31 = vld [vmem:[#allocation8 + $0xe8] sm:$0xff]  ;;  %v3371_v10 = vmul.f32 %v1900_v36, %v3848_v63 }
 0x10d   :  { %3894 = vst [vmem:[#allocation35_spill] sm:$0xff] %v3322_v40  ;;  %v3334_v62 = vmul.f32 %v1977_v50, %v3238_v52  ;;  %v3337_v23 = vmul.f32 %v1978_v1, %v3238_v52  ;;  %v3340_v0 = vmul.f32 %v1979_v31, %v3238_v52  ;;  %v1980_v4 = vld [vmem:[#allocation8 + $0xf0] sm:$0xff]  ;;  %v3345_v54 = vld [vmem:[#allocation9 + $0x58] sm:$0xff]  ;;  %v573_v50 = vadd.f32 %v572_v44, %v3298_v55  ;;  %v3356_v31 = vld [vmem:[#allocation9 + $0x60] sm:$0xff]  ;;  %p2136_p1 = por %p2135_p0, %p2134_p13 }
 0x10e   :  { %v3343_v39 = vmul.f32 %v1980_v4, %v3238_v52  ;;  %3897 = vst [vmem:[#allocation83_spill] sm:$0xff] %v3345_v54  ;;  %v3349_v43 = vmul.f32 %v3345_v54, %v3179_v60  ;;  %v1982_v27 = vld [vmem:[#allocation8 + $0xf8] sm:$0xff]  ;;  %3899 = vst [vmem:[#allocation86_spill] sm:$0xff] %v3356_v31  ;;  %v3360_v4 = vmul.f32 %v3356_v31, %v3191_v16  ;;  %v3362_v21 = vld [vmem:[#allocation9 + $0x68] sm:$0xff] }
 0x10f   :  { %v3353_v1 = vmul.f32 %v1982_v27, %v3238_v52  ;;  %3900 = vst [vmem:[#allocation87_spill] sm:$0xff] %v3362_v21  ;;  %v3366_v60 = vmul.f32 %v3362_v21, %v3225_v6  ;;  %v903_v44 = vadd.f32 %v887_v34, %v3127_v33  ;;  %v1985_v54 = vld [vmem:[#allocation8 + $0x100] sm:$0xff]  ;;  %v3374_v52 = vmul.f32 %v1902_v57, %v2714_v45  ;;  %v1986_v49 = vld [vmem:[#allocation8 + $0x108] sm:$0xff]  ;;  %v1987_v33 = vld [vmem:[#allocation8 + $0x110] sm:$0xff]  ;;  %p2137_p2 = pnand %p2136_p1, %p2130_p12 }
 0x110   :  { %3898 = vst [vmem:[#allocation84_spill] sm:$0xff] %v3349_v43  ;;  %v954_v27 = vmul.f32 %v1985_v54, %v3292_v11  ;;  %v574_v16 = vadd.f32 %v573_v50, %v3322_v40  ;;  %v955_v31 = vmul.f32 %v1986_v49, %v3292_v11  ;;  %v904_v6 = vadd.f32 %v888_v51, %v3171_v3  ;;  %v1988_v54 = vld [vmem:[#allocation8 + $0x118] sm:$0xff]  ;;  %v1989_v36 = vld [vmem:[#allocation8 + $0x120] sm:$0xff]  ;;  %v1992_v40 = vld [vmem:[#allocation8 + $0x190] sm:$0xff] }
 0x111   :  { %v905_v21 = vadd.f32 %v889_v20, %v3174_v18  ;;  %v956_v34 = vmul.f32 %v1987_v33, %v3292_v11  ;;  %v957_v55 = vmul.f32 %v1988_v54, %v3292_v11  ;;  %v906_v45 = vadd.f32 %v890_v12, %v3189_v28  ;;  %v1990_v54 = vld [vmem:[#allocation8 + $0x180] sm:$0xff]  ;;  %v1991_v28 = vld [vmem:[#allocation8 + $0x188] sm:$0xff] }
 0x112   :  { %v575_v63 = vadd.f32 %v574_v16, %v3349_v43  ;;  %v958_v57 = vmul.f32 %v1989_v36, %v3292_v11  ;;  %v3386_v50 = vstv %s3305_s5  ;;  %v907_v49 = vadd.f32 %v891_v25, %v3194_v26  ;;  %v1993_v25 = vld [vmem:[#allocation8 + $0x198] sm:$0xff] }
 0x113   :  { %v908_v3 = vadd.f32 %v892_v17, %v3197_v41  ;;  %v959_v18 = vmul.f32 %v3036_v32, %v3292_v11  ;;  %v970_v51 = vadd.f32 %v954_v27, %v902_v9  ;;  %v971_v33 = vadd.f32 %v955_v31, %v903_v44  ;;  %v1994_v31 = vld [vmem:[#allocation8 + $0x1a0] sm:$0xff] }
 0x114   :  { %v576_v20 = vadd.f32 %v575_v63, %v3360_v4  ;;  %v1022_v16 = vmul.f32 %v1990_v54, %v3386_v50  ;;  %v1023_v12 = vmul.f32 %v1991_v28, %v3386_v50  ;;  %v972_v36 = vadd.f32 %v956_v34, %v904_v6 }
 0x115   :  { %v973_v43 = vadd.f32 %v957_v55, %v905_v21  ;;  %v1024_v26 = vmul.f32 %v1992_v40, %v3386_v50  ;;  %v1025_v41 = vmul.f32 %v1993_v25, %v3386_v50  ;;  %v960_v9 = vmul.f32 %v3040_v35, %v3292_v11 }
 0x116   :  { %v577_v32 = vadd.f32 %v576_v20, %v3366_v60  ;;  %v974_v17 = vadd.f32 %v958_v57, %v906_v45  ;;  %v1026_v44 = vmul.f32 %v1994_v31, %v3386_v50  ;;  %v909_v27 = vadd.f32 %v3313_v30, %v3200_v37 }
 0x117   :  { %v961_v21 = vmul.f32 %v3046_v59, %v3292_v11  ;;  %v975_v55 = vadd.f32 %v959_v18, %v907_v49  ;;  %v1027_v40 = vmul.f32 %v3068_v22, %v3386_v50  ;;  %v910_v34 = vadd.f32 %v3316_v47, %v3203_v56  ;;  %v1995_v18 = vld [vmem:[#allocation8 + $0x1b0] sm:$0xff] }
 0x118   :  { %v578_v6 = vadd.f32 %v577_v32, %v3371_v10  ;;  %v1038_v35 = vadd.f32 %v1022_v16, %v970_v51  ;;  %v1039_v63 = vadd.f32 %v1023_v12, %v971_v33  ;;  %v911_v45 = vadd.f32 %v3327_v38, %v3235_v48  ;;  %v1996_v51 = vld [vmem:[#allocation8 + $0x1b8] sm:$0xff] }
 0x119   :  { %v912_v37 = vadd.f32 %v3331_v58, %v3241_v46  ;;  %v1040_v30 = vadd.f32 %v1024_v26, %v972_v36  ;;  %v1041_v57 = vadd.f32 %v1025_v41, %v973_v43  ;;  %v976_v49 = vadd.f32 %v960_v9, %v908_v3  ;;  %v1999_v32 = vld [vmem:[#allocation8 + $0x158] sm:$0xff] }
 0x11a   :  { %v579_v59 = vadd.f32 %v578_v6, %v3374_v52  ;;  %v1028_v22 = vmul.f32 %v1995_v18, %v3386_v50  ;;  %v1042_v20 = vadd.f32 %v1026_v44, %v974_v17  ;;  %v913_v56 = vadd.f32 %v3334_v62, %v3244_v7  ;;  %v2003_v6 = vld [vmem:[#allocation8 + $0x170] sm:$0xff] }
 0x11b   :  { %v977_v47 = vadd.f32 %v961_v21, %v909_v27  ;;  %v1029_v33 = vmul.f32 %v1996_v51, %v3386_v50  ;;  %v1043_v48 = vadd.f32 %v1027_v40, %v975_v55  ;;  %v914_v46 = vadd.f32 %v3337_v23, %v3247_v2  ;;  %v2001_v27 = vld [vmem:[#allocation8 + $0x160] sm:$0xff]  ;;  %v2007_v51 = vld [vmem:[#allocation8 + $0x1d8] sm:$0xff] }
 0x11c   :  { %v580_v38 = vrot.slane %v579_v59, 4  ;;  %v1143_v58 = vmul.f32 1.442695, %v1038_v35  ;;  %v1145_v43 = vmul.f32 1.442695, %v1039_v63  ;;  %v915_v3 = vadd.f32 %v3340_v0, %v3250_v14  ;;  %v1997_v14 = vld [vmem:[#allocation8 + $0x148] sm:$0xff] }
 0x11d   :  { %v962_v54 = vmul.f32 %v3050_v24, %v3292_v11  ;;  %v1147_v16 = vmul.f32 1.442695, %v1040_v30  ;;  %v1149_v28 = vmul.f32 1.442695, %v1041_v57  ;;  %v1044_v62 = vadd.f32 %v1028_v22, %v976_v49  ;;  %v1998_v24 = vld [vmem:[#allocation8 + $0x150] sm:$0xff]  ;;  %v2004_v63 = vld [vmem:[#allocation8 + $0x1c8] sm:$0xff] }
 0x11e   :  { %v581_v7 = vadd.f32 %v580_v38, %v579_v59  ;;  %1903 = vpow2.f32 %v1143_v58  ;;  %v1151_v12 = vmul.f32 1.442695, %v1042_v20  ;;  %v916_v36 = vadd.f32 %v3343_v39, %v3280_v53  ;;  %v2000_v39 = vld [vmem:[#allocation8 + $0x1c0] sm:$0xff]  ;;  %v2005_v57 = vld [vmem:[#allocation8 + $0x178] sm:$0xff]  ;;  %v2006_v22 = vld [vmem:[#allocation8 + $0x1d0] sm:$0xff] }
 0x11f   :  { %v1045_v26 = vadd.f32 %v1029_v33, %v977_v47  ;;  %1905 = vpow2.f32 %v1145_v43  ;;  %v1153_v23 = vmul.f32 1.442695, %v1043_v48  ;;  %v917_v25 = vadd.f32 %v3353_v1, %v3283_v42  ;;  %v2002_v1 = vld [vmem:[#allocation8 + $0x168] sm:$0xff] }
 0x120   :  { %v582_v2 = vrot.slane %v581_v7, 2  ;;  %v963_v0 = vmul.f32 %v1997_v14, %v3292_v11  ;;  %1907 = vpow2.f32 %v1147_v16  ;;  %v964_v41 = vmul.f32 %v1998_v24, %v3292_v11  ;;  %v2011_v14 = vld [vmem:[#allocation9 + $0x8] sm:$0xff] }
 0x121   :  { %v965_v9 = vmul.f32 %v1999_v32, %v3292_v11  ;;  %v978_v17 = vadd.f32 %v962_v54, %v910_v34  ;;  %1909 = vpow2.f32 %v1149_v28  ;;  %v1030_v31 = vmul.f32 %v2000_v39, %v3386_v50  ;;  %v2013_v32 = vld [vmem:[#allocation8 + $0x1f8] sm:$0xff] }
 0x122   :  { %v583_v53 = vadd.f32 %v582_v2, %v581_v7  ;;  %1911 = vpow2.f32 %v1151_v12  ;;  %v1155_v44 = vmul.f32 1.442695, %v1044_v62  ;;  %v966_v42 = vmul.f32 %v2001_v27, %v3292_v11  ;;  %v2015_v27 = vld [vmem:[#allocation9 + $0x18] sm:$0xff] }
 0x123   :  { %v967_v21 = vmul.f32 %v2002_v1, %v3292_v11  ;;  %1913 = vpow2.f32 %v1153_v23  ;;  %v1157_v55 = vmul.f32 1.442695, %v1045_v26  ;;  %v968_v35 = vmul.f32 %v2003_v6, %v3292_v11  ;;  %v2010_v26 = vld [vmem:[#allocation9] sm:$0xff] }
 0x124   :  { %v584_v40 = vrot.slane %v583_v53, 1  ;;  %v979_v34 = vadd.f32 %v963_v0, %v911_v45  ;;  %v1031_v30 = vmul.f32 %v2004_v63, %v3386_v50  ;;  %v969_v59 = vmul.f32 %v2005_v57, %v3292_v11  ;;  %v2008_v45 = vld [vmem:[#allocation8 + $0x1e0] sm:$0xff] }
 0x125   :  { %v980_v49 = vadd.f32 %v964_v41, %v912_v37  ;;  %v981_v18 = vadd.f32 %v965_v9, %v913_v56  ;;  %v1032_v20 = vmul.f32 %v2006_v22, %v3386_v50  ;;  %v1033_v33 = vmul.f32 %v2007_v51, %v3386_v50  ;;  %v2009_v37 = vld [vmem:[#allocation8 + $0x1e8] sm:$0xff]  ;;  %v2016_v6 = vld [vmem:[#allocation9 + $0x20] sm:$0xff] }
 0x126   :  { %v585_v47 = vadd.f32 %v584_v40, %v583_v53  ;;  %v1046_v48 = vadd.f32 %v1030_v31, %v978_v17  ;;  %1915 = vpow2.f32 %v1155_v44  ;;  %v982_v38 = vadd.f32 %v966_v42, %v914_v46 }
 0x127   :  { %v983_v58 = vadd.f32 %v967_v21, %v915_v3  ;;  %v1034_v43 = vmul.f32 %v2008_v45, %v3386_v50  ;;  %1917 = vpow2.f32 %v1157_v55  ;;  %v984_v11 = vadd.f32 %v968_v35, %v916_v36  ;;  %v2012_v36 = vld [vmem:[#allocation8 + $0x1f0] sm:$0xff] }
 0x128   :  { %v1904_v54 = vpop.eup %1903  ;;  %vm586_vm2 = vcmp.eq.f32.partialorder %v585_v47, 0.0  ;;  %v1035_v56 = vmul.f32 %v2009_v37, %v3386_v50  ;;  %v1047_v16 = vadd.f32 %v1031_v30, %v979_v34  ;;  %v985_v62 = vadd.f32 %v969_v59, %v917_v25  ;;  %v2014_v25 = vld [vmem:[#allocation9 + $0x10] sm:$0xff] }
 0x129   :  { %v1906_v28 = vpop.eup %1905  ;;  %v587_v7 = vsel %vm586_vm2, 1.0, %v585_v47  ;;  %v1048_v12 = vadd.f32 %v1032_v20, %v980_v49  ;;  %v3442_v23 = vmul.f32 %v2010_v26, %v1904_v54  ;;  %v1049_v3 = vadd.f32 %v1033_v33, %v981_v18  ;;  %v3905_v26 = vld [vmem:[#allocation33_spill] sm:$0xff] }
 0x12a   :  { %v1908_v46 = vpop.eup %1907  ;;  %1919 = vrcp.f32 %v587_v7  ;;  %v1159_v2 = vmul.f32 1.442695, %v1046_v48  ;;  %v3444_v0 = vmul.f32 %v2011_v14, %v1906_v28  ;;  %v1036_v41 = vmul.f32 %v2012_v36, %v3386_v50  ;;  %v3903_v28 = vld [vmem:[#allocation29_spill] sm:$0xff]  ;;  %v3904_v7 = vld [vmem:[#allocation30_spill] sm:$0xff] }
 0x12b   :  { %v1910_v24 = vpop.eup %1909  ;;  %v1037_v9 = vmul.f32 %v2013_v32, %v3386_v50  ;;  %v1050_v17 = vadd.f32 %v1034_v43, %v982_v38  ;;  %v3448_v53 = vmul.f32 %v2014_v25, %v1908_v46  ;;  %v1051_v31 = vadd.f32 %v1035_v56, %v983_v58  ;;  %v3902_v56 = vld [vmem:[#allocation28_spill] sm:$0xff] }
 0x12c   :  { %v1912_v39 = vpop.eup %1911  ;;  %v1161_v44 = vmul.f32 1.442695, %v1047_v16  ;;  %v3450_v42 = vmul.f32 %v2015_v27, %v1910_v24  ;;  %v1191_v1 = vadd.f32 %v3444_v0, %v3442_v23  ;;  %v1163_v55 = vmul.f32 1.442695, %v1048_v12 }
 0x12d   :  { %v1914_v21 = vpop.eup %1913  ;;  %1921 = vpow2.f32 %v1159_v2  ;;  %v1165_v40 = vmul.f32 1.442695, %v1049_v3  ;;  %v3454_v35 = vmul.f32 %v2016_v6, %v1912_v39  ;;  %v1052_v34 = vadd.f32 %v1036_v41, %v984_v11  ;;  %v3901_v11 = vld [vmem:[#allocation27_spill] sm:$0xff]  ;;  %v3906_v3 = vld [vmem:[#allocation36_spill] sm:$0xff] }
 0x12e   :  { %v1192_v50 = vadd.f32 %v1191_v1, %v3448_v53  ;;  %v1053_v63 = vadd.f32 %v1037_v9, %v985_v62  ;;  %v1167_v30 = vmul.f32 1.442695, %v1050_v17  ;;  %1923 = vpow2.f32 %v1161_v44  ;;  %v3909_v1 = vld [vmem:[#allocation31_spill] sm:$0xff] }
 0x12f   :  { %v1169_v59 = vmul.f32 1.442695, %v1051_v31  ;;  %v3458_v49 = vmul.f32 %v3159_v5, %v1914_v21  ;;  %1925 = vpow2.f32 %v1163_v55  ;;  %v1171_v47 = vmul.f32 1.442695, %v1052_v34 }
 0x130   :  { %v1916_v57 = vpop.eup %1915  ;;  %v1193_v18 = vadd.f32 %v1192_v50, %v3450_v42  ;;  %1927 = vpow2.f32 %v1165_v40  ;;  %v1173_v51 = vmul.f32 1.442695, %v1053_v63 }
 0x131   :  { %v1918_v22 = vpop.eup %1917  ;;  %1929 = vpow2.f32 %v1167_v30  ;;  %v3463_v48 = vmul.f32 %v3181_v61, %v1916_v57  ;;  %v3912_v57 = vld [vmem:[#allocation83_spill] sm:$0xff] }
 0x132   :  { %v1194_v20 = vadd.f32 %v1193_v18, %v3454_v35  ;;  %1931 = vpow2.f32 %v1169_v59  ;;  %v3466_v38 = vmul.f32 %v3227_v8, %v1918_v22  ;;  %v3913_v22 = vld [vmem:[#allocation86_spill] sm:$0xff] }
 0x133   :  { %1933 = vpow2.f32 %v1171_v47 }
 0x134   :  { %v1920_v33 = vpop.eup %1919  ;;  %v1195_v5 = vadd.f32 %v1194_v20, %v3458_v49  ;;  %1935 = vpow2.f32 %v1173_v51 }
 0x135   :  { %v590_v58 = vmul.f32 %v1920_v33, %v3098_v29  ;;  %v591_v45 = vmul.f32 %v1920_v33, %v3101_v19  ;;  %v592_v43 = vmul.f32 %v1920_v33, %v3104_v15  ;;  %v593_v54 = vmul.f32 %v1920_v33, %v3109_v13  ;;  %v3907_v15 = vld [vmem:[#allocation35_spill] sm:$0xff]  ;;  %v3908_v13 = vld [vmem:[#allocation84_spill] sm:$0xff] }
 0x136   :  { %v594_v37 = vmul.f32 %v1920_v33, %v3901_v11  ;;  %v595_v16 = vmul.f32 %v1920_v33, %v3902_v56  ;;  %v596_v61 = vmul.f32 %v1920_v33, %v3903_v28  ;;  %v597_v62 = vmul.f32 %v1920_v33, %v3904_v7 }
 0x137   :  { %v1647_v8 = vpack.c.bf16 %v591_v45, %v590_v58  ;;  %v1652_v12 = vpack.c.bf16 %v593_v54, %v592_v43  ;;  %v598_v46 = vmul.f32 %v1920_v33, %v3905_v26  ;;  %v599_v29 = vmul.f32 %v1920_v33, %v3906_v3  ;;  %v1922_v2 = vpop.eup %1921  ;;  %v2017_v43 = vld [vmem:[#allocation9 + $0x70] sm:$0xff] }
 0x138   :  { %v1657_v19 = vpack.c.bf16 %v595_v16, %v594_v37  ;;  %v1662_v14 = vpack.c.bf16 %v597_v62, %v596_v61  ;;  %v600_v24 = vmul.f32 %v1920_v33, %v3907_v15  ;;  %v601_v36 = vmul.f32 %v1920_v33, %v3908_v13  ;;  %v1924_v25 = vpop.eup %1923  ;;  %v2018_v37 = vld [vmem:[#allocation9 + $0x78] sm:$0xff] }
 0x139   :  { %1648 = vst [vmem:[#allocation14] sm:$0xff] %v1647_v8   ;;  %1771 = vst [vmem:[#allocation14 + $0x8] sm:$0xff] %v1652_v12   ;;  %v1667_v41 = vpack.c.bf16 %v599_v29, %v598_v46  ;;  %v602_v32 = vmul.f32 %v1920_v33, %v3360_v4  ;;  %v603_v9 = vmul.f32 %v1920_v33, %v3366_v60  ;;  %v1926_v44 = vpop.eup %1925 }
 0x13a   :  { %v604_v17 = vmul.f32 %v1920_v33, %v3371_v10  ;;  %1772 = vst [vmem:[#allocation14 + $0x10] sm:$0xff] %v1657_v19   ;;  %1773 = vst [vmem:[#allocation14 + $0x18] sm:$0xff] %v1662_v14   ;;  %v1672_v39 = vpack.c.bf16 %v601_v36, %v600_v24  ;;  %v605_v31 = vmul.f32 %v1920_v33, %v3374_v52  ;;  %v1928_v40 = vpop.eup %1927  ;;  %v3910_v10 = vld [vmem:[#allocation34_spill] sm:$0xff]  ;;  %v3911_v52 = vld [vmem:[#allocation92_spill] sm:$0xff] }
 0x13b   :  { %1774 = vst [vmem:[#allocation14 + $0x20] sm:$0xff] %v1667_v41   ;;  %v1677_v27 = vpack.c.bf16 %v603_v9, %v602_v32  ;;  %v1183_v21 = vmul.f32 %v3909_v1, %v1922_v2  ;;  %v1196_v55 = vadd.f32 %v1195_v5, %v3463_v48  ;;  %v1930_v60 = vpop.eup %1929  ;;  %v1184_v6 = vmul.f32 %v3910_v10, %v1924_v25  ;;  %v3914_v5 = vld [vmem:[#allocation87_spill] sm:$0xff] }
 0x13c   :  { %1775 = vst [vmem:[#allocation14 + $0x28] sm:$0xff] %v1672_v39   ;;  %v1682_v4 = vpack.c.bf16 %v605_v31, %v604_v17  ;;  %v1932_v34 = vpop.eup %1931  ;;  %v1185_v63 = vmul.f32 %v3911_v52, %v1926_v44  ;;  %v1186_v59 = vmul.f32 %v3912_v57, %v1928_v40  ;;  %v1187_v20 = vmul.f32 %v3913_v22, %v1930_v60 }
 0x13d   :  { %1776 = vst [vmem:[#allocation14 + $0x30] sm:$0xff] %v1677_v27   ;;  %v1197_v50 = vadd.f32 %v1196_v55, %v3466_v38  ;;  %v1934_v33 = vpop.eup %1933  ;;  %v1188_v51 = vmul.f32 %v3914_v5, %v1932_v34 }
 0x13e   :  { %1777 = vst [vmem:[#allocation14 + $0x38] sm:$0xff] %v1682_v4   ;;  %v1936_v45 = vpop.eup %1935  ;;  %v1189_v54 = vmul.f32 %v2017_v43, %v1934_v33 }
 0x13f   :  { %v1198_v30 = vadd.f32 %v1197_v50, %v1183_v21  ;;  %v1190_v56 = vmul.f32 %v2018_v37, %v1936_v45 }
 0x141   :  { %v1199_v18 = vadd.f32 %v1198_v30, %v1184_v6 }
 0x143   :  { %v1200_v47 = vadd.f32 %v1199_v18, %v1185_v63 }
 0x145   :  { %v1201_v58 = vadd.f32 %v1200_v47, %v1186_v59 }
 0x147   :  { %v1202_v11 = vadd.f32 %v1201_v58, %v1187_v20 }
 0x149   :  { %v1203_v16 = vadd.f32 %v1202_v11, %v1188_v51 }
 0x14b   :  { %v1204_v28 = vadd.f32 %v1203_v16, %v1189_v54 }
 0x14d   :  { %v1205_v61 = vadd.f32 %v1204_v28, %v1190_v56 }
 0x14f   :  { %v1206_v7 = vrot.slane %v1205_v61, 4 }
 0x151   :  { %v1207_v62 = vadd.f32 %v1206_v7, %v1205_v61 }
 0x153   :  { %v1208_v8 = vrot.slane %v1207_v62, 2 }
 0x155   :  { %v1209_v12 = vadd.f32 %v1208_v8, %v1207_v62 }
 0x157   :  { %v1210_v26 = vrot.slane %v1209_v12, 1 }
 0x159   :  { %v1211_v46 = vadd.f32 %v1210_v26, %v1209_v12 }
 0x15b   :  { %vm1212_vm3 = vcmp.eq.f32.partialorder %v1211_v46, 0.0 }
 0x15c   :  { %v1213_v3 = vsel %vm1212_vm3, 1.0, %v1211_v46 }
 0x15d   :  { %1937 = vrcp.f32 %v1213_v3 }
 0x167   :  { %v1938_v29 = vpop.eup %1937 }
 0x168   :  { %v1216_v2 = vmul.f32 %v1938_v29, %v3442_v23  ;;  %v1217_v19 = vmul.f32 %v1938_v29, %v3444_v0  ;;  %v1218_v14 = vmul.f32 %v1938_v29, %v3448_v53  ;;  %v1219_v15 = vmul.f32 %v1938_v29, %v3450_v42 }
 0x169   :  { %v1220_v24 = vmul.f32 %v1938_v29, %v3454_v35  ;;  %v1221_v13 = vmul.f32 %v1938_v29, %v3458_v49  ;;  %v1222_v36 = vmul.f32 %v1938_v29, %v3463_v48  ;;  %v1223_v41 = vmul.f32 %v1938_v29, %v3466_v38 }
 0x16a   :  { %v1727_v32 = vpack.c.bf16 %v1217_v19, %v1216_v2  ;;  %v1732_v9 = vpack.c.bf16 %v1219_v15, %v1218_v14  ;;  %v1224_v17 = vmul.f32 %v1938_v29, %v1183_v21  ;;  %v1225_v25 = vmul.f32 %v1938_v29, %v1184_v6 }
 0x16b   :  { %v1737_v39 = vpack.c.bf16 %v1221_v13, %v1220_v24  ;;  %v1742_v23 = vpack.c.bf16 %v1223_v41, %v1222_v36  ;;  %v1226_v31 = vmul.f32 %v1938_v29, %v1185_v63  ;;  %v1227_v0 = vmul.f32 %v1938_v29, %v1186_v59 }
 0x16c   :  { %1728 = vst [vmem:[#allocation14 + $0x40] sm:$0xff] %v1727_v32   ;;  %1785 = vst [vmem:[#allocation14 + $0x48] sm:$0xff] %v1732_v9   ;;  %v1747_v53 = vpack.c.bf16 %v1225_v25, %v1224_v17  ;;  %v1228_v42 = vmul.f32 %v1938_v29, %v1187_v20  ;;  %v1229_v44 = vmul.f32 %v1938_v29, %v1188_v51 }
 0x16d   :  { %v1230_v35 = vmul.f32 %v1938_v29, %v1189_v54  ;;  %1786 = vst [vmem:[#allocation14 + $0x50] sm:$0xff] %v1737_v39   ;;  %1787 = vst [vmem:[#allocation14 + $0x58] sm:$0xff] %v1742_v23   ;;  %v1752_v49 = vpack.c.bf16 %v1227_v0, %v1226_v31  ;;  %v1231_v48 = vmul.f32 %v1938_v29, %v1190_v56 }
 0x16e   :  { %1788 = vst [vmem:[#allocation14 + $0x60] sm:$0xff] %v1747_v53   ;;  %v1757_v38 = vpack.c.bf16 %v1229_v44, %v1228_v42 }
 0x16f   :  { %1789 = vst [vmem:[#allocation14 + $0x68] sm:$0xff] %v1752_v49   ;;  %v1762_v27 = vpack.c.bf16 %v1231_v48, %v1230_v35 }
 0x170   :  { %1790 = vst [vmem:[#allocation14 + $0x70] sm:$0xff] %v1757_v38  }
 0x171   :  { %1791 = vst [vmem:[#allocation14 + $0x78] sm:$0xff] %v1762_v27  }
 0x172   :  { %2140 = shalt.err (!%p2137_p2)
}
 0x173   :  { %s2141_s27 = scalar_lea.hbm %s3522_s6, 2048 }
 0x174   :  { %p2142_p3 = scmp.ne.s32.totalorder %s3522_s6, %s2141_s27  ;;  %p2145_p4 = scmp.lt.u32.totalorder %s2141_s27, %s3522_s6 }
 0x176   :  { %p2147_p5 = pnand %p2145_p4, %p2142_p3 }
 0x178   :  { %2150 = shalt.err (!%p2147_p5)
}
 0x179   :  { %1446 = dma.vmem_to_hbm [thread:$0]  %s1441_s23, 2048, %s3522_s6, [#allocation13], %s2171_s17, %s2171_s17, %s2172_s0  }
 0x17a   :  { %2159 = dma.done.wait [#allocation4], 4096  }
 0x17b   :  { %2160 = vsyncadd [#allocation4], 4294963200 }
 0x17c   :  { %2161 = dma.done.wait [#allocation13], 4096  }
 0x17d   :  { %2162 = vsyncadd [#allocation13], 4294963200 }
 0x17e   :  { %1456 = vsyncpa [#allocation3], 1 }
 0x17f   :  { %1457 = vsyncpa [#allocation10], 1 }
 0x180   :  { %1458 = vsyncpa [#allocation4], 1 }
 0x181   :  { %1459 = vsyncpa [#allocation13], 1 }
 0x182   :  { %1460 = vsyncpa [#allocation5], 1 }
 0x183   :  { %1461 = vsyncpa [#allocation6], 1 }

</bundles_post_ra>
